<compile_context>
chip_gen: v7x
topology: tpu7x:2x2x1
jax: 0.10.0
libtpu: 0.0.40
codegen_flags: <defaults>
</compile_context>

<pallas_src>
import math
import jax
import jax.numpy as jnp
from jax.experimental import pallas as pl
from jax.experimental.pallas import tpu as pltpu  # noqa: F401  (used if CORE_PARALLEL path is enabled)

# ----------------------------- mini config ---------------------------------
VOCAB = 100
VOCAB_PAD = 128   # pad vocab rows so the one-hot gather matmul is lane-dense
MAX_POS = 16
H = 32            # hidden size
N_HEADS = 4
D_HEAD = H // N_HEADS
FFN = 64
N_LAYERS = 2
NUM_TAGS = 5
TAGS_PAD = 128    # lane-dense logits store; sliced back to NUM_TAGS in the wrapper
LN_EPS = 1e-12    # DistilBERT LayerNorm eps

# ---- global slab row layout (GROWS, 128) ----
G_POS = VOCAB_PAD            # rows 128:128+MAX_POS : positional embeddings (lanes 0:H)
G_VEC = VOCAB_PAD + MAX_POS  # 144: row 144 emb_ln_g, 145 emb_ln_b, 146 cls_b
G_CLSW = 152                 # rows 152:152+H : classifier weight rows (lanes 0:TAGS_PAD)
GROWS = G_CLSW + H           # 184 (multiple of 8)

# ---- per-layer slab row layout (N_LAYERS, LROWS, 128) ----
L_WQKV = 0                   # rows   0:32  lanes 0:3H   [Wq | Wk | Wv]
L_WO = H                     # rows  32:64  lanes 0:H
L_W1 = 2 * H                 # rows  64:96  lanes 0:FFN
L_W2 = 3 * H                 # rows  96:160 lanes 0:H
L_VEC = 3 * H + FFN          # rows 160:168 : bqkv, bo, sa_g, sa_b, b1, b2, out_g, out_b
LROWS = L_VEC + 8            # 168 (multiple of 8)


def _layer_norm(x, g, b, eps=LN_EPS):
    # var = E[x^2] - mu^2 : two independent reductions (dual-issue on XLU) instead of a chained one.
    mu = jnp.mean(x, axis=-1, keepdims=True)
    ms = jnp.mean(x * x, axis=-1, keepdims=True)
    var = ms - mu * mu
    return (x - mu) * jax.lax.rsqrt(var + eps) * g + b


def _softmax(x):
    m = jnp.max(x, axis=-1, keepdims=True)
    e = jnp.exp(x - m)
    return e / jnp.sum(e, axis=-1, keepdims=True)


# ------------------ Pallas kernel: fully fused forward ----------------------
def _fused_forward_kernel(ids_ref, bias_ref, gslab_ref, lslab_ref, out_ref):
    # Single program for the whole batch.
    # ids_ref:  (T, 1) int32 flattened token ids (T = B*S)
    # bias_ref: (B, 1, S) f32 additive attention bias (0 keep / -1e9 masked)
    # gslab_ref:(GROWS, 128) f32 global slab; lslab_ref:(L, LROWS, 128) f32 per-layer slab
    T = ids_ref.shape[0]
    B = bias_ref.shape[0]
    S = bias_ref.shape[2]

    # --- embedding: one-hot gather (MXU) + positional add + LayerNorm ---
    ids = ids_ref[...]                                                         # (T, 1)
    one_hot = (jax.lax.broadcasted_iota(jnp.int32, (T, VOCAB_PAD), 1)
               == ids).astype(jnp.float32)                                     # (T, 128)
    wemb = gslab_ref[0:VOCAB_PAD, 0:H]                                         # (128, H)
    x = jnp.dot(one_hot, wemb, preferred_element_type=jnp.float32)             # (T, H)

    pos = gslab_ref[G_POS:G_POS + S, 0:H]                                      # (S, H)
    x = x + jnp.concatenate([pos] * B, axis=0)                                 # tile pos over batch

    gv = gslab_ref[G_VEC:G_VEC + 8, :]                                         # (8, 128)
    x = _layer_norm(x, gv[0:1, 0:H], gv[1:2, 0:H])

    bias3 = bias_ref[...]                                                      # (B, 1, S)
    scale = jnp.float32(1.0 / math.sqrt(D_HEAD))

    # --- encoder layers (static unrolled loop over the stacked layer slab) ---
    for l in range(N_LAYERS):
        wqkv = lslab_ref[l, L_WQKV:L_WQKV + H, 0:3 * H]                        # (H, 3H)
        wo = lslab_ref[l, L_WO:L_WO + H, 0:H]                                  # (H, H)
        w1 = lslab_ref[l, L_W1:L_W1 + H, 0:FFN]                                # (H, FFN)
        w2 = lslab_ref[l, L_W2:L_W2 + FFN, 0:H]                                # (FFN, H)
        vec = lslab_ref[l, L_VEC:L_VEC + 8, :]                                 # (8, 128)
        bqkv, bo = vec[0:1, 0:3 * H], vec[1:2, 0:H]
        sa_g, sa_b = vec[2:3, 0:H], vec[3:4, 0:H]
        b1, b2 = vec[4:5, 0:FFN], vec[5:6, 0:H]
        out_g, out_b = vec[6:7, 0:H], vec[7:8, 0:H]

        # fused QKV: one (T,H) @ (H,3H) matmul (no head-batched broadcast of x)
        qkv = jnp.dot(x, wqkv, preferred_element_type=jnp.float32) + bqkv      # (T, 3H)

        ctx_heads = []
        for h in range(N_HEADS):
            q = qkv[:, h * D_HEAD:(h + 1) * D_HEAD].reshape(B, S, D_HEAD)
            k = qkv[:, H + h * D_HEAD:H + (h + 1) * D_HEAD].reshape(B, S, D_HEAD)
            v = qkv[:, 2 * H + h * D_HEAD:2 * H + (h + 1) * D_HEAD].reshape(B, S, D_HEAD)
            s = jnp.einsum('bqd,bkd->bqk', q, k,
                           preferred_element_type=jnp.float32) * scale + bias3  # (B, S, S)
            p = _softmax(s)
            ctx = jnp.einsum('bqk,bkd->bqd', p, v,
                             preferred_element_type=jnp.float32)                # (B, S, D)
            ctx_heads.append(ctx.reshape(T, D_HEAD))
        ctx = jnp.concatenate(ctx_heads, axis=-1)                               # (T, H)

        # single output projection instead of per-head matmuls + cross-head sum
        attn = jnp.dot(ctx, wo, preferred_element_type=jnp.float32) + bo
        h1 = _layer_norm(x + attn, sa_g, sa_b)

        ff = jnp.dot(h1, w1, preferred_element_type=jnp.float32) + b1
        # TODO(synk): DistilBERT uses exact erf-GELU; tanh-approx GELU used for Mosaic-safe lowering.
        ff = jax.nn.gelu(ff, approximate=True)
        ff = jnp.dot(ff, w2, preferred_element_type=jnp.float32) + b2
        x = _layer_norm(h1 + ff, out_g, out_b)

    # --- classifier epilogue on the CLS token of each sequence, lane-dense padded logits ---
    cls = jnp.concatenate([x[b * S:b * S + 1, :] for b in range(B)], axis=0)    # (B, H)
    cls_w = gslab_ref[G_CLSW:G_CLSW + H, 0:TAGS_PAD]                            # (H, 128)
    cls_b = gv[2:3, 0:TAGS_PAD]                                                 # (1, 128)
    logits = jnp.dot(cls, cls_w, preferred_element_type=jnp.float32) + cls_b
    out_ref[...] = logits.astype(out_ref.dtype)                                 # (B, TAGS_PAD)


@jax.jit
def mini_tag_transformer(packed, input_ids, attention_mask):
    B, S = input_ids.shape
    T = B * S
    ids2 = input_ids.astype(jnp.int32).reshape(T, 1)                            # (T, 1)
    attn_bias = ((attention_mask.astype(jnp.float32) - 1.0) * 1e9)[:, None, :]  # (B, 1, S)

    # Single pallas_call, no grid: everything (inputs + ~270 KB of weights) lives in VMEM for one
    # program invocation; output is lane-dense (B, 128).
    logits_pad = pl.pallas_call(
        _fused_forward_kernel,
        out_shape=jax.ShapeDtypeStruct((B, TAGS_PAD), jnp.float32),
    )(ids2, attn_bias, packed["gslab"], packed["lslab"])
    return logits_pad[:, :NUM_TAGS]


# ------------------------- parameters (synthetic) ---------------------------
def init_params(key):
    keys = iter(jax.random.split(key, 64))

    def nrm(shape, scale=0.02):
        return (scale * jax.random.normal(next(keys), shape)).astype(jnp.float32)

    params = {
        "word_emb": nrm((VOCAB, H)),
        "pos_emb": nrm((MAX_POS, H)),
        "emb_ln_g": jnp.ones((1, H), jnp.float32),
        "emb_ln_b": jnp.zeros((1, H), jnp.float32),
        "cls_w": nrm((H, NUM_TAGS)),
        "cls_b": jnp.zeros((1, NUM_TAGS), jnp.float32),
        "layers": [],
    }
    for _ in range(N_LAYERS):
        layer = (
            nrm((H, H)), jnp.zeros((1, H), jnp.float32),      # wq, bq
            nrm((H, H)), jnp.zeros((1, H), jnp.float32),      # wk, bk
            nrm((H, H)), jnp.zeros((1, H), jnp.float32),      # wv, bv
            nrm((H, H)), jnp.zeros((1, H), jnp.float32),      # wo, bo
            jnp.ones((1, H), jnp.float32), jnp.zeros((1, H), jnp.float32),   # sa_layer_norm
            nrm((H, FFN)), jnp.zeros((1, FFN), jnp.float32),  # ffn lin1
            nrm((FFN, H)), jnp.zeros((1, H), jnp.float32),    # ffn lin2
            jnp.ones((1, H), jnp.float32), jnp.zeros((1, H), jnp.float32),   # output_layer_norm
        )
        params["layers"].append(layer)
    return params


def pack_params(params):
    """Host-side repacking into two lane-dense (*, 128) slabs (global + stacked per-layer)."""
    gslab = jnp.zeros((GROWS, 128), jnp.float32)
    gslab = gslab.at[0:VOCAB, 0:H].set(params["word_emb"])
    gslab = gslab.at[G_POS:G_POS + MAX_POS, 0:H].set(params["pos_emb"])
    gslab = gslab.at[G_VEC, 0:H].set(params["emb_ln_g"][0])
    gslab = gslab.at[G_VEC + 1, 0:H].set(params["emb_ln_b"][0])
    gslab = gslab.at[G_VEC + 2, 0:NUM_TAGS].set(params["cls_b"][0])
    gslab = gslab.at[G_CLSW:G_CLSW + H, 0:NUM_TAGS].set(params["cls_w"])

    lslabs = []
    for (wq, bq, wk, bk, wv, bv, wo, bo, g1, bn1, w1, b1, w2, b2, g2, bn2) in params["layers"]:
        ls = jnp.zeros((LROWS, 128), jnp.float32)
        wqkv = jnp.concatenate([wq, wk, wv], axis=1)          # (H, 3H), columns [Wq|Wk|Wv]
        bqkv = jnp.concatenate([bq, bk, bv], axis=1)          # (1, 3H)
        ls = ls.at[L_WQKV:L_WQKV + H, 0:3 * H].set(wqkv)
        ls = ls.at[L_WO:L_WO + H, 0:H].set(wo)
        ls = ls.at[L_W1:L_W1 + H, 0:FFN].set(w1)
        ls = ls.at[L_W2:L_W2 + FFN, 0:H].set(w2)
        ls = ls.at[L_VEC + 0, 0:3 * H].set(bqkv[0])
        ls = ls.at[L_VEC + 1, 0:H].set(bo[0])
        ls = ls.at[L_VEC + 2, 0:H].set(g1[0])
        ls = ls.at[L_VEC + 3, 0:H].set(bn1[0])
        ls = ls.at[L_VEC + 4, 0:FFN].set(b1[0])
        ls = ls.at[L_VEC + 5, 0:H].set(b2[0])
        ls = ls.at[L_VEC + 6, 0:H].set(g2[0])
        ls = ls.at[L_VEC + 7, 0:H].set(bn2[0])
        lslabs.append(ls)

    return {"gslab": gslab, "lslab": jnp.stack(lslabs)}


# ----------------------------- pure-JAX reference ---------------------------
def _ref_forward(params, input_ids, attention_mask):
    B, S = input_ids.shape
    scale = jnp.float32(1.0 / math.sqrt(D_HEAD))
    x = params["word_emb"][input_ids] + params["pos_emb"][:S][None, :, :]
    x = _layer_norm(x, params["emb_ln_g"], params["emb_ln_b"])
    bias = ((attention_mask.astype(jnp.float32) - 1.0) * 1e9)[:, None, None, :]   # (B,1,1,S)
    for (wq, bq, wk, bk, wv, bv, wo, bo, g1, bn1, w1, b1, w2, b2, g2, bn2) in params["layers"]:
        q, k, v = x @ wq + bq, x @ wk + bk, x @ wv + bv

        def split(t):
            return t.reshape(B, S, N_HEADS, D_HEAD).transpose(0, 2, 1, 3)

        qh, kh, vh = split(q), split(k), split(v)
        s = (qh @ kh.transpose(0, 1, 3, 2)) * scale + bias
        p = _softmax(s)
        ctx = (p @ vh).transpose(0, 2, 1, 3).reshape(B, S, H)
        h1 = _layer_norm(x + ctx @ wo + bo, g1, bn1)
        ff = jax.nn.gelu(h1 @ w1 + b1, approximate=True) @ w2 + b2
        x = _layer_norm(h1 + ff, g2, bn2)
    return x[:, 0, :] @ params["cls_w"] + params["cls_b"]


if __name__ == "__main__":
    key = jax.random.PRNGKey(0)
    pkey, ikey = jax.random.split(key)
    params = init_params(pkey)
    packed = pack_params(params)

    B, S = 2, 8
    input_ids = jax.random.randint(ikey, (B, S), 0, VOCAB, dtype=jnp.int32)
    attention_mask = jnp.array([[1] * S, [1] * (S - 2) + [0] * 2], dtype=jnp.int32)

    logits = mini_tag_transformer(packed, input_ids, attention_mask)
    jax.block_until_ready(logits)
    assert logits.shape == (B, NUM_TAGS), logits.shape

    ref = _ref_forward(params, input_ids, attention_mask)
    assert jnp.allclose(logits, ref, atol=1e-4, rtol=1e-4), (logits, ref)

    print("KERNEL_OK")
</pallas_src>

<mosaic_0001>
module attributes {stable_mosaic.version = 11 : i64} {
  func.func @_fused_forward_kernel(%arg0: memref<16x1xi32, #tpu.memory_space<vmem>>, %arg1: memref<2x1x8xf32, #tpu.memory_space<vmem>>, %arg2: memref<184x128xf32, #tpu.memory_space<vmem>>, %arg3: memref<2x168x128xf32, #tpu.memory_space<vmem>>, %arg4: memref<2x128xf32, #tpu.memory_space<vmem>>) attributes {dimension_semantics = [], scalar_prefetch = 0 : i64, scratch_operands = 0 : i64, tpu.core_type = #tpu.core_type<tc>} {
    %c0 = arith.constant 0 : index
    %c0_0 = arith.constant 0 : index
    %0 = vector.load %arg0[%c0, %c0_0] : memref<16x1xi32, #tpu.memory_space<vmem>>, vector<16x1xi32>
    %1 = tpu.iota {dimensions = array<i32: 1>} : vector<16x128xi32>
    %2 = vector.broadcast %0 : vector<16x1xi32> to vector<16x128xi32>
    %3 = arith.cmpi eq, %1, %2 : vector<16x128xi32>
    %4 = arith.extui %3 : vector<16x128xi1> to vector<16x128xi32>
    %5 = arith.sitofp %4 : vector<16x128xi32> to vector<16x128xf32>
    %c0_1 = arith.constant 0 : index
    %c0_2 = arith.constant 0 : index
    %6 = vector.load %arg2[%c0_1, %c0_2] : memref<184x128xf32, #tpu.memory_space<vmem>>, vector<128x32xf32>
    %cst = arith.constant dense<0.000000e+00> : vector<16x32xf32>
    %7 = tpu.matmul %5, %6, %cst {dimension_numbers = #tpu.dot_dimension_numbers<[1], [0], [0], [1], [0, 0, 1, 1], [], []>} : vector<16x128xf32>, vector<128x32xf32>, vector<16x32xf32> -> vector<16x32xf32>
    %c128 = arith.constant 128 : index
    %c0_3 = arith.constant 0 : index
    %8 = vector.load %arg2[%c128, %c0_3] : memref<184x128xf32, #tpu.memory_space<vmem>>, vector<8x32xf32>
    %9 = tpu.concatenate %8, %8 in 0 : vector<8x32xf32>, vector<8x32xf32> -> vector<16x32xf32>
    %10 = arith.addf %7, %9 : vector<16x32xf32>
    %c144 = arith.constant 144 : index
    %c0_4 = arith.constant 0 : index
    %11 = vector.load %arg2[%c144, %c0_4] : memref<184x128xf32, #tpu.memory_space<vmem>>, vector<8x128xf32>
    %12 = vector.extract_strided_slice %11 {offsets = [0, 0], sizes = [1, 32], strides = [1, 1]} : vector<8x128xf32> to vector<1x32xf32>
    %13 = vector.extract_strided_slice %11 {offsets = [1, 0], sizes = [1, 32], strides = [1, 1]} : vector<8x128xf32> to vector<1x32xf32>
    %cst_5 = arith.constant dense<0.000000e+00> : vector<16xf32>
    %14 = vector.multi_reduction <add>, %10, %cst_5 [1] : vector<16x32xf32> to vector<16xf32>
    %15 = vector.shape_cast %14 : vector<16xf32> to vector<16x1xf32>
    %cst_6 = arith.constant 3.200000e+01 : f32
    %16 = vector.broadcast %cst_6 : f32 to vector<16x1xf32>
    %17 = arith.divf %15, %16 : vector<16x1xf32>
    %18 = arith.mulf %10, %10 : vector<16x32xf32>
    %cst_7 = arith.constant dense<0.000000e+00> : vector<16xf32>
    %19 = vector.multi_reduction <add>, %18, %cst_7 [1] : vector<16x32xf32> to vector<16xf32>
    %20 = vector.shape_cast %19 : vector<16xf32> to vector<16x1xf32>
    %cst_8 = arith.constant 3.200000e+01 : f32
    %21 = vector.broadcast %cst_8 : f32 to vector<16x1xf32>
    %22 = arith.divf %20, %21 : vector<16x1xf32>
    %23 = arith.mulf %17, %17 : vector<16x1xf32>
    %24 = arith.subf %22, %23 : vector<16x1xf32>
    %25 = vector.broadcast %17 : vector<16x1xf32> to vector<16x32xf32>
    %26 = arith.subf %10, %25 : vector<16x32xf32>
    %cst_9 = arith.constant 9.99999996E-13 : f32
    %27 = vector.broadcast %cst_9 : f32 to vector<16x1xf32>
    %28 = arith.addf %24, %27 : vector<16x1xf32>
    %29 = math.rsqrt %28 : vector<16x1xf32>
    %30 = vector.broadcast %29 : vector<16x1xf32> to vector<16x32xf32>
    %31 = arith.mulf %26, %30 : vector<16x32xf32>
    %32 = vector.broadcast %12 : vector<1x32xf32> to vector<16x32xf32>
    %33 = arith.mulf %31, %32 : vector<16x32xf32>
    %34 = vector.broadcast %13 : vector<1x32xf32> to vector<16x32xf32>
    %35 = arith.addf %33, %34 : vector<16x32xf32>
    %c0_10 = arith.constant 0 : index
    %c0_11 = arith.constant 0 : index
    %c0_12 = arith.constant 0 : index
    %36 = vector.load %arg1[%c0_10, %c0_11, %c0_12] : memref<2x1x8xf32, #tpu.memory_space<vmem>>, vector<2x1x8xf32>
    %c0_13 = arith.constant 0 : index
    %c0_14 = arith.constant 0 : index
    %c0_15 = arith.constant 0 : index
    %37 = vector.load %arg3[%c0_13, %c0_14, %c0_15] : memref<2x168x128xf32, #tpu.memory_space<vmem>>, vector<1x32x96xf32>
    %38 = vector.shape_cast %37 : vector<1x32x96xf32> to vector<32x96xf32>
    %c0_16 = arith.constant 0 : index
    %c32 = arith.constant 32 : index
    %c0_17 = arith.constant 0 : index
    %39 = vector.load %arg3[%c0_16, %c32, %c0_17] : memref<2x168x128xf32, #tpu.memory_space<vmem>>, vector<1x32x32xf32>
    %40 = vector.shape_cast %39 : vector<1x32x32xf32> to vector<32x32xf32>
    %c0_18 = arith.constant 0 : index
    %c64 = arith.constant 64 : index
    %c0_19 = arith.constant 0 : index
    %41 = vector.load %arg3[%c0_18, %c64, %c0_19] : memref<2x168x128xf32, #tpu.memory_space<vmem>>, vector<1x32x64xf32>
    %42 = vector.shape_cast %41 : vector<1x32x64xf32> to vector<32x64xf32>
    %c0_20 = arith.constant 0 : index
    %c96 = arith.constant 96 : index
    %c0_21 = arith.constant 0 : index
    %43 = vector.load %arg3[%c0_20, %c96, %c0_21] : memref<2x168x128xf32, #tpu.memory_space<vmem>>, vector<1x64x32xf32>
    %44 = vector.shape_cast %43 : vector<1x64x32xf32> to vector<64x32xf32>
    %c0_22 = arith.constant 0 : index
    %c160 = arith.constant 160 : index
    %c0_23 = arith.constant 0 : index
    %45 = vector.load %arg3[%c0_22, %c160, %c0_23] : memref<2x168x128xf32, #tpu.memory_space<vmem>>, vector<1x8x128xf32>
    %46 = vector.shape_cast %45 : vector<1x8x128xf32> to vector<8x128xf32>
    %47 = vector.extract_strided_slice %46 {offsets = [0, 0], sizes = [1, 96], strides = [1, 1]} : vector<8x128xf32> to vector<1x96xf32>
    %48 = vector.extract_strided_slice %46 {offsets = [1, 0], sizes = [1, 32], strides = [1, 1]} : vector<8x128xf32> to vector<1x32xf32>
    %49 = vector.extract_strided_slice %46 {offsets = [2, 0], sizes = [1, 32], strides = [1, 1]} : vector<8x128xf32> to vector<1x32xf32>
    %50 = vector.extract_strided_slice %46 {offsets = [3, 0], sizes = [1, 32], strides = [1, 1]} : vector<8x128xf32> to vector<1x32xf32>
    %51 = vector.extract_strided_slice %46 {offsets = [4, 0], sizes = [1, 64], strides = [1, 1]} : vector<8x128xf32> to vector<1x64xf32>
    %52 = vector.extract_strided_slice %46 {offsets = [5, 0], sizes = [1, 32], strides = [1, 1]} : vector<8x128xf32> to vector<1x32xf32>
    %53 = vector.extract_strided_slice %46 {offsets = [6, 0], sizes = [1, 32], strides = [1, 1]} : vector<8x128xf32> to vector<1x32xf32>
    %54 = vector.extract_strided_slice %46 {offsets = [7, 0], sizes = [1, 32], strides = [1, 1]} : vector<8x128xf32> to vector<1x32xf32>
    %cst_24 = arith.constant dense<0.000000e+00> : vector<16x96xf32>
    %55 = tpu.matmul %35, %38, %cst_24 {dimension_numbers = #tpu.dot_dimension_numbers<[1], [0], [0], [1], [0, 0, 1, 1], [], []>} : vector<16x32xf32>, vector<32x96xf32>, vector<16x96xf32> -> vector<16x96xf32>
    %56 = vector.broadcast %47 : vector<1x96xf32> to vector<16x96xf32>
    %57 = arith.addf %55, %56 : vector<16x96xf32>
    %58 = vector.extract_strided_slice %57 {offsets = [0, 0], sizes = [16, 8], strides = [1, 1]} : vector<16x96xf32> to vector<16x8xf32>
    %59 = vector.shape_cast %58 : vector<16x8xf32> to vector<2x8x8xf32>
    %60 = vector.extract_strided_slice %57 {offsets = [0, 32], sizes = [16, 8], strides = [1, 1]} : vector<16x96xf32> to vector<16x8xf32>
    %61 = vector.shape_cast %60 : vector<16x8xf32> to vector<2x8x8xf32>
    %62 = vector.extract_strided_slice %57 {offsets = [0, 64], sizes = [16, 8], strides = [1, 1]} : vector<16x96xf32> to vector<16x8xf32>
    %63 = vector.shape_cast %62 : vector<16x8xf32> to vector<2x8x8xf32>
    "tpu.trace_start"() <{level = 10 : i32, message = "bqd,bkd->bqk"}> : () -> ()
    %cst_25 = arith.constant dense<0.000000e+00> : vector<2x8x8xf32>
    %64 = tpu.matmul %59, %61, %cst_25 {dimension_numbers = #tpu.dot_dimension_numbers<[2], [2], [1], [1], [0, 0, 0, 1, 1, 1], [0], [0]>} : vector<2x8x8xf32>, vector<2x8x8xf32>, vector<2x8x8xf32> -> vector<2x8x8xf32>
    "tpu.trace_stop"() : () -> ()
    %cst_26 = arith.constant 0.353553385 : f32
    %65 = vector.broadcast %cst_26 : f32 to vector<2x8x8xf32>
    %66 = arith.mulf %64, %65 : vector<2x8x8xf32>
    %67 = vector.broadcast %36 : vector<2x1x8xf32> to vector<2x8x8xf32>
    %68 = arith.addf %66, %67 : vector<2x8x8xf32>
    %cst_27 = arith.constant dense<0xFF800000> : vector<2x8xf32>
    %69 = vector.multi_reduction <maximumf>, %68, %cst_27 [2] : vector<2x8x8xf32> to vector<2x8xf32>
    %70 = vector.shape_cast %69 : vector<2x8xf32> to vector<2x8x1xf32>
    %71 = vector.broadcast %70 : vector<2x8x1xf32> to vector<2x8x8xf32>
    %72 = arith.subf %68, %71 : vector<2x8x8xf32>
    %73 = math.exp %72 : vector<2x8x8xf32>
    %cst_28 = arith.constant dense<0.000000e+00> : vector<2x8xf32>
    %74 = vector.multi_reduction <add>, %73, %cst_28 [2] : vector<2x8x8xf32> to vector<2x8xf32>
    %75 = vector.shape_cast %74 : vector<2x8xf32> to vector<2x8x1xf32>
    %76 = vector.broadcast %75 : vector<2x8x1xf32> to vector<2x8x8xf32>
    %77 = arith.divf %73, %76 : vector<2x8x8xf32>
    "tpu.trace_start"() <{level = 10 : i32, message = "bqk,bkd->bqd"}> : () -> ()
    %cst_29 = arith.constant dense<0.000000e+00> : vector<2x8x8xf32>
    %78 = tpu.matmul %77, %63, %cst_29 {dimension_numbers = #tpu.dot_dimension_numbers<[2], [1], [1], [2], [0, 0, 0, 1, 1, 2], [0], [0]>} : vector<2x8x8xf32>, vector<2x8x8xf32>, vector<2x8x8xf32> -> vector<2x8x8xf32>
    "tpu.trace_stop"() : () -> ()
    %79 = vector.shape_cast %78 : vector<2x8x8xf32> to vector<16x8xf32>
    %80 = vector.extract_strided_slice %57 {offsets = [0, 8], sizes = [16, 8], strides = [1, 1]} : vector<16x96xf32> to vector<16x8xf32>
    %81 = vector.shape_cast %80 : vector<16x8xf32> to vector<2x8x8xf32>
    %82 = vector.extract_strided_slice %57 {offsets = [0, 40], sizes = [16, 8], strides = [1, 1]} : vector<16x96xf32> to vector<16x8xf32>
    %83 = vector.shape_cast %82 : vector<16x8xf32> to vector<2x8x8xf32>
    %84 = vector.extract_strided_slice %57 {offsets = [0, 72], sizes = [16, 8], strides = [1, 1]} : vector<16x96xf32> to vector<16x8xf32>
    %85 = vector.shape_cast %84 : vector<16x8xf32> to vector<2x8x8xf32>
    "tpu.trace_start"() <{level = 10 : i32, message = "bqd,bkd->bqk"}> : () -> ()
    %cst_30 = arith.constant dense<0.000000e+00> : vector<2x8x8xf32>
    %86 = tpu.matmul %81, %83, %cst_30 {dimension_numbers = #tpu.dot_dimension_numbers<[2], [2], [1], [1], [0, 0, 0, 1, 1, 1], [0], [0]>} : vector<2x8x8xf32>, vector<2x8x8xf32>, vector<2x8x8xf32> -> vector<2x8x8xf32>
    "tpu.trace_stop"() : () -> ()
    %cst_31 = arith.constant 0.353553385 : f32
    %87 = vector.broadcast %cst_31 : f32 to vector<2x8x8xf32>
    %88 = arith.mulf %86, %87 : vector<2x8x8xf32>
    %89 = vector.broadcast %36 : vector<2x1x8xf32> to vector<2x8x8xf32>
    %90 = arith.addf %88, %89 : vector<2x8x8xf32>
    %cst_32 = arith.constant dense<0xFF800000> : vector<2x8xf32>
    %91 = vector.multi_reduction <maximumf>, %90, %cst_32 [2] : vector<2x8x8xf32> to vector<2x8xf32>
    %92 = vector.shape_cast %91 : vector<2x8xf32> to vector<2x8x1xf32>
    %93 = vector.broadcast %92 : vector<2x8x1xf32> to vector<2x8x8xf32>
    %94 = arith.subf %90, %93 : vector<2x8x8xf32>
    %95 = math.exp %94 : vector<2x8x8xf32>
    %cst_33 = arith.constant dense<0.000000e+00> : vector<2x8xf32>
    %96 = vector.multi_reduction <add>, %95, %cst_33 [2] : vector<2x8x8xf32> to vector<2x8xf32>
    %97 = vector.shape_cast %96 : vector<2x8xf32> to vector<2x8x1xf32>
    %98 = vector.broadcast %97 : vector<2x8x1xf32> to vector<2x8x8xf32>
    %99 = arith.divf %95, %98 : vector<2x8x8xf32>
    "tpu.trace_start"() <{level = 10 : i32, message = "bqk,bkd->bqd"}> : () -> ()
    %cst_34 = arith.constant dense<0.000000e+00> : vector<2x8x8xf32>
    %100 = tpu.matmul %99, %85, %cst_34 {dimension_numbers = #tpu.dot_dimension_numbers<[2], [1], [1], [2], [0, 0, 0, 1, 1, 2], [0], [0]>} : vector<2x8x8xf32>, vector<2x8x8xf32>, vector<2x8x8xf32> -> vector<2x8x8xf32>
    "tpu.trace_stop"() : () -> ()
    %101 = vector.shape_cast %100 : vector<2x8x8xf32> to vector<16x8xf32>
    %102 = vector.extract_strided_slice %57 {offsets = [0, 16], sizes = [16, 8], strides = [1, 1]} : vector<16x96xf32> to vector<16x8xf32>
    %103 = vector.shape_cast %102 : vector<16x8xf32> to vector<2x8x8xf32>
    %104 = vector.extract_strided_slice %57 {offsets = [0, 48], sizes = [16, 8], strides = [1, 1]} : vector<16x96xf32> to vector<16x8xf32>
    %105 = vector.shape_cast %104 : vector<16x8xf32> to vector<2x8x8xf32>
    %106 = vector.extract_strided_slice %57 {offsets = [0, 80], sizes = [16, 8], strides = [1, 1]} : vector<16x96xf32> to vector<16x8xf32>
    %107 = vector.shape_cast %106 : vector<16x8xf32> to vector<2x8x8xf32>
    "tpu.trace_start"() <{level = 10 : i32, message = "bqd,bkd->bqk"}> : () -> ()
    %cst_35 = arith.constant dense<0.000000e+00> : vector<2x8x8xf32>
    %108 = tpu.matmul %103, %105, %cst_35 {dimension_numbers = #tpu.dot_dimension_numbers<[2], [2], [1], [1], [0, 0, 0, 1, 1, 1], [0], [0]>} : vector<2x8x8xf32>, vector<2x8x8xf32>, vector<2x8x8xf32> -> vector<2x8x8xf32>
    "tpu.trace_stop"() : () -> ()
    %cst_36 = arith.constant 0.353553385 : f32
    %109 = vector.broadcast %cst_36 : f32 to vector<2x8x8xf32>
    %110 = arith.mulf %108, %109 : vector<2x8x8xf32>
    %111 = vector.broadcast %36 : vector<2x1x8xf32> to vector<2x8x8xf32>
    %112 = arith.addf %110, %111 : vector<2x8x8xf32>
    %cst_37 = arith.constant dense<0xFF800000> : vector<2x8xf32>
    %113 = vector.multi_reduction <maximumf>, %112, %cst_37 [2] : vector<2x8x8xf32> to vector<2x8xf32>
    %114 = vector.shape_cast %113 : vector<2x8xf32> to vector<2x8x1xf32>
    %115 = vector.broadcast %114 : vector<2x8x1xf32> to vector<2x8x8xf32>
    %116 = arith.subf %112, %115 : vector<2x8x8xf32>
    %117 = math.exp %116 : vector<2x8x8xf32>
    %cst_38 = arith.constant dense<0.000000e+00> : vector<2x8xf32>
    %118 = vector.multi_reduction <add>, %117, %cst_38 [2] : vector<2x8x8xf32> to vector<2x8xf32>
    %119 = vector.shape_cast %118 : vector<2x8xf32> to vector<2x8x1xf32>
    %120 = vector.broadcast %119 : vector<2x8x1xf32> to vector<2x8x8xf32>
    %121 = arith.divf %117, %120 : vector<2x8x8xf32>
    "tpu.trace_start"() <{level = 10 : i32, message = "bqk,bkd->bqd"}> : () -> ()
    %cst_39 = arith.constant dense<0.000000e+00> : vector<2x8x8xf32>
    %122 = tpu.matmul %121, %107, %cst_39 {dimension_numbers = #tpu.dot_dimension_numbers<[2], [1], [1], [2], [0, 0, 0, 1, 1, 2], [0], [0]>} : vector<2x8x8xf32>, vector<2x8x8xf32>, vector<2x8x8xf32> -> vector<2x8x8xf32>
    "tpu.trace_stop"() : () -> ()
    %123 = vector.shape_cast %122 : vector<2x8x8xf32> to vector<16x8xf32>
    %124 = vector.extract_strided_slice %57 {offsets = [0, 24], sizes = [16, 8], strides = [1, 1]} : vector<16x96xf32> to vector<16x8xf32>
    %125 = vector.shape_cast %124 : vector<16x8xf32> to vector<2x8x8xf32>
    %126 = vector.extract_strided_slice %57 {offsets = [0, 56], sizes = [16, 8], strides = [1, 1]} : vector<16x96xf32> to vector<16x8xf32>
    %127 = vector.shape_cast %126 : vector<16x8xf32> to vector<2x8x8xf32>
    %128 = vector.extract_strided_slice %57 {offsets = [0, 88], sizes = [16, 8], strides = [1, 1]} : vector<16x96xf32> to vector<16x8xf32>
    %129 = vector.shape_cast %128 : vector<16x8xf32> to vector<2x8x8xf32>
    "tpu.trace_start"() <{level = 10 : i32, message = "bqd,bkd->bqk"}> : () -> ()
    %cst_40 = arith.constant dense<0.000000e+00> : vector<2x8x8xf32>
    %130 = tpu.matmul %125, %127, %cst_40 {dimension_numbers = #tpu.dot_dimension_numbers<[2], [2], [1], [1], [0, 0, 0, 1, 1, 1], [0], [0]>} : vector<2x8x8xf32>, vector<2x8x8xf32>, vector<2x8x8xf32> -> vector<2x8x8xf32>
    "tpu.trace_stop"() : () -> ()
    %cst_41 = arith.constant 0.353553385 : f32
    %131 = vector.broadcast %cst_41 : f32 to vector<2x8x8xf32>
    %132 = arith.mulf %130, %131 : vector<2x8x8xf32>
    %133 = vector.broadcast %36 : vector<2x1x8xf32> to vector<2x8x8xf32>
    %134 = arith.addf %132, %133 : vector<2x8x8xf32>
    %cst_42 = arith.constant dense<0xFF800000> : vector<2x8xf32>
    %135 = vector.multi_reduction <maximumf>, %134, %cst_42 [2] : vector<2x8x8xf32> to vector<2x8xf32>
    %136 = vector.shape_cast %135 : vector<2x8xf32> to vector<2x8x1xf32>
    %137 = vector.broadcast %136 : vector<2x8x1xf32> to vector<2x8x8xf32>
    %138 = arith.subf %134, %137 : vector<2x8x8xf32>
    %139 = math.exp %138 : vector<2x8x8xf32>
    %cst_43 = arith.constant dense<0.000000e+00> : vector<2x8xf32>
    %140 = vector.multi_reduction <add>, %139, %cst_43 [2] : vector<2x8x8xf32> to vector<2x8xf32>
    %141 = vector.shape_cast %140 : vector<2x8xf32> to vector<2x8x1xf32>
    %142 = vector.broadcast %141 : vector<2x8x1xf32> to vector<2x8x8xf32>
    %143 = arith.divf %139, %142 : vector<2x8x8xf32>
    "tpu.trace_start"() <{level = 10 : i32, message = "bqk,bkd->bqd"}> : () -> ()
    %cst_44 = arith.constant dense<0.000000e+00> : vector<2x8x8xf32>
    %144 = tpu.matmul %143, %129, %cst_44 {dimension_numbers = #tpu.dot_dimension_numbers<[2], [1], [1], [2], [0, 0, 0, 1, 1, 2], [0], [0]>} : vector<2x8x8xf32>, vector<2x8x8xf32>, vector<2x8x8xf32> -> vector<2x8x8xf32>
    "tpu.trace_stop"() : () -> ()
    %145 = vector.shape_cast %144 : vector<2x8x8xf32> to vector<16x8xf32>
    %146 = tpu.concatenate %79, %101, %123, %145 in 1 : vector<16x8xf32>, vector<16x8xf32>, vector<16x8xf32>, vector<16x8xf32> -> vector<16x32xf32>
    %cst_45 = arith.constant dense<0.000000e+00> : vector<16x32xf32>
    %147 = tpu.matmul %146, %40, %cst_45 {dimension_numbers = #tpu.dot_dimension_numbers<[1], [0], [0], [1], [0, 0, 1, 1], [], []>} : vector<16x32xf32>, vector<32x32xf32>, vector<16x32xf32> -> vector<16x32xf32>
    %148 = vector.broadcast %48 : vector<1x32xf32> to vector<16x32xf32>
    %149 = arith.addf %147, %148 : vector<16x32xf32>
    %150 = arith.addf %35, %149 : vector<16x32xf32>
    %cst_46 = arith.constant dense<0.000000e+00> : vector<16xf32>
    %151 = vector.multi_reduction <add>, %150, %cst_46 [1] : vector<16x32xf32> to vector<16xf32>
    %152 = vector.shape_cast %151 : vector<16xf32> to vector<16x1xf32>
    %cst_47 = arith.constant 3.200000e+01 : f32
    %153 = vector.broadcast %cst_47 : f32 to vector<16x1xf32>
    %154 = arith.divf %152, %153 : vector<16x1xf32>
    %155 = arith.mulf %150, %150 : vector<16x32xf32>
    %cst_48 = arith.constant dense<0.000000e+00> : vector<16xf32>
    %156 = vector.multi_reduction <add>, %155, %cst_48 [1] : vector<16x32xf32> to vector<16xf32>
    %157 = vector.shape_cast %156 : vector<16xf32> to vector<16x1xf32>
    %cst_49 = arith.constant 3.200000e+01 : f32
    %158 = vector.broadcast %cst_49 : f32 to vector<16x1xf32>
    %159 = arith.divf %157, %158 : vector<16x1xf32>
    %160 = arith.mulf %154, %154 : vector<16x1xf32>
    %161 = arith.subf %159, %160 : vector<16x1xf32>
    %162 = vector.broadcast %154 : vector<16x1xf32> to vector<16x32xf32>
    %163 = arith.subf %150, %162 : vector<16x32xf32>
    %cst_50 = arith.constant 9.99999996E-13 : f32
    %164 = vector.broadcast %cst_50 : f32 to vector<16x1xf32>
    %165 = arith.addf %161, %164 : vector<16x1xf32>
    %166 = math.rsqrt %165 : vector<16x1xf32>
    %167 = vector.broadcast %166 : vector<16x1xf32> to vector<16x32xf32>
    %168 = arith.mulf %163, %167 : vector<16x32xf32>
    %169 = vector.broadcast %49 : vector<1x32xf32> to vector<16x32xf32>
    %170 = arith.mulf %168, %169 : vector<16x32xf32>
    %171 = vector.broadcast %50 : vector<1x32xf32> to vector<16x32xf32>
    %172 = arith.addf %170, %171 : vector<16x32xf32>
    %cst_51 = arith.constant dense<0.000000e+00> : vector<16x64xf32>
    %173 = tpu.matmul %172, %42, %cst_51 {dimension_numbers = #tpu.dot_dimension_numbers<[1], [0], [0], [1], [0, 0, 1, 1], [], []>} : vector<16x32xf32>, vector<32x64xf32>, vector<16x64xf32> -> vector<16x64xf32>
    %174 = vector.broadcast %51 : vector<1x64xf32> to vector<16x64xf32>
    %175 = arith.addf %173, %174 : vector<16x64xf32>
    %176 = arith.mulf %175, %175 : vector<16x64xf32>
    %177 = arith.mulf %175, %176 : vector<16x64xf32>
    %cst_52 = arith.constant 4.471500e-02 : f32
    %178 = vector.broadcast %cst_52 : f32 to vector<16x64xf32>
    %179 = arith.mulf %178, %177 : vector<16x64xf32>
    %180 = arith.addf %175, %179 : vector<16x64xf32>
    %cst_53 = arith.constant 0.797884583 : f32
    %181 = vector.broadcast %cst_53 : f32 to vector<16x64xf32>
    %182 = arith.mulf %181, %180 : vector<16x64xf32>
    %183 = math.tanh %182 : vector<16x64xf32>
    %cst_54 = arith.constant 1.000000e+00 : f32
    %184 = vector.broadcast %cst_54 : f32 to vector<16x64xf32>
    %185 = arith.addf %184, %183 : vector<16x64xf32>
    %cst_55 = arith.constant 5.000000e-01 : f32
    %186 = vector.broadcast %cst_55 : f32 to vector<16x64xf32>
    %187 = arith.mulf %186, %185 : vector<16x64xf32>
    %188 = arith.mulf %175, %187 : vector<16x64xf32>
    %cst_56 = arith.constant dense<0.000000e+00> : vector<16x32xf32>
    %189 = tpu.matmul %188, %44, %cst_56 {dimension_numbers = #tpu.dot_dimension_numbers<[1], [0], [0], [1], [0, 0, 1, 1], [], []>} : vector<16x64xf32>, vector<64x32xf32>, vector<16x32xf32> -> vector<16x32xf32>
    %190 = vector.broadcast %52 : vector<1x32xf32> to vector<16x32xf32>
    %191 = arith.addf %189, %190 : vector<16x32xf32>
    %192 = arith.addf %172, %191 : vector<16x32xf32>
    %cst_57 = arith.constant dense<0.000000e+00> : vector<16xf32>
    %193 = vector.multi_reduction <add>, %192, %cst_57 [1] : vector<16x32xf32> to vector<16xf32>
    %194 = vector.shape_cast %193 : vector<16xf32> to vector<16x1xf32>
    %cst_58 = arith.constant 3.200000e+01 : f32
    %195 = vector.broadcast %cst_58 : f32 to vector<16x1xf32>
    %196 = arith.divf %194, %195 : vector<16x1xf32>
    %197 = arith.mulf %192, %192 : vector<16x32xf32>
    %cst_59 = arith.constant dense<0.000000e+00> : vector<16xf32>
    %198 = vector.multi_reduction <add>, %197, %cst_59 [1] : vector<16x32xf32> to vector<16xf32>
    %199 = vector.shape_cast %198 : vector<16xf32> to vector<16x1xf32>
    %cst_60 = arith.constant 3.200000e+01 : f32
    %200 = vector.broadcast %cst_60 : f32 to vector<16x1xf32>
    %201 = arith.divf %199, %200 : vector<16x1xf32>
    %202 = arith.mulf %196, %196 : vector<16x1xf32>
    %203 = arith.subf %201, %202 : vector<16x1xf32>
    %204 = vector.broadcast %196 : vector<16x1xf32> to vector<16x32xf32>
    %205 = arith.subf %192, %204 : vector<16x32xf32>
    %cst_61 = arith.constant 9.99999996E-13 : f32
    %206 = vector.broadcast %cst_61 : f32 to vector<16x1xf32>
    %207 = arith.addf %203, %206 : vector<16x1xf32>
    %208 = math.rsqrt %207 : vector<16x1xf32>
    %209 = vector.broadcast %208 : vector<16x1xf32> to vector<16x32xf32>
    %210 = arith.mulf %205, %209 : vector<16x32xf32>
    %211 = vector.broadcast %53 : vector<1x32xf32> to vector<16x32xf32>
    %212 = arith.mulf %210, %211 : vector<16x32xf32>
    %213 = vector.broadcast %54 : vector<1x32xf32> to vector<16x32xf32>
    %214 = arith.addf %212, %213 : vector<16x32xf32>
    %c1 = arith.constant 1 : index
    %c0_62 = arith.constant 0 : index
    %c0_63 = arith.constant 0 : index
    %215 = vector.load %arg3[%c1, %c0_62, %c0_63] : memref<2x168x128xf32, #tpu.memory_space<vmem>>, vector<1x32x96xf32>
    %216 = vector.shape_cast %215 : vector<1x32x96xf32> to vector<32x96xf32>
    %c1_64 = arith.constant 1 : index
    %c32_65 = arith.constant 32 : index
    %c0_66 = arith.constant 0 : index
    %217 = vector.load %arg3[%c1_64, %c32_65, %c0_66] : memref<2x168x128xf32, #tpu.memory_space<vmem>>, vector<1x32x32xf32>
    %218 = vector.shape_cast %217 : vector<1x32x32xf32> to vector<32x32xf32>
    %c1_67 = arith.constant 1 : index
    %c64_68 = arith.constant 64 : index
    %c0_69 = arith.constant 0 : index
    %219 = vector.load %arg3[%c1_67, %c64_68, %c0_69] : memref<2x168x128xf32, #tpu.memory_space<vmem>>, vector<1x32x64xf32>
    %220 = vector.shape_cast %219 : vector<1x32x64xf32> to vector<32x64xf32>
    %c1_70 = arith.constant 1 : index
    %c96_71 = arith.constant 96 : index
    %c0_72 = arith.constant 0 : index
    %221 = vector.load %arg3[%c1_70, %c96_71, %c0_72] : memref<2x168x128xf32, #tpu.memory_space<vmem>>, vector<1x64x32xf32>
    %222 = vector.shape_cast %221 : vector<1x64x32xf32> to vector<64x32xf32>
    %c1_73 = arith.constant 1 : index
    %c160_74 = arith.constant 160 : index
    %c0_75 = arith.constant 0 : index
    %223 = vector.load %arg3[%c1_73, %c160_74, %c0_75] : memref<2x168x128xf32, #tpu.memory_space<vmem>>, vector<1x8x128xf32>
    %224 = vector.shape_cast %223 : vector<1x8x128xf32> to vector<8x128xf32>
    %225 = vector.extract_strided_slice %224 {offsets = [0, 0], sizes = [1, 96], strides = [1, 1]} : vector<8x128xf32> to vector<1x96xf32>
    %226 = vector.extract_strided_slice %224 {offsets = [1, 0], sizes = [1, 32], strides = [1, 1]} : vector<8x128xf32> to vector<1x32xf32>
    %227 = vector.extract_strided_slice %224 {offsets = [2, 0], sizes = [1, 32], strides = [1, 1]} : vector<8x128xf32> to vector<1x32xf32>
    %228 = vector.extract_strided_slice %224 {offsets = [3, 0], sizes = [1, 32], strides = [1, 1]} : vector<8x128xf32> to vector<1x32xf32>
    %229 = vector.extract_strided_slice %224 {offsets = [4, 0], sizes = [1, 64], strides = [1, 1]} : vector<8x128xf32> to vector<1x64xf32>
    %230 = vector.extract_strided_slice %224 {offsets = [5, 0], sizes = [1, 32], strides = [1, 1]} : vector<8x128xf32> to vector<1x32xf32>
    %231 = vector.extract_strided_slice %224 {offsets = [6, 0], sizes = [1, 32], strides = [1, 1]} : vector<8x128xf32> to vector<1x32xf32>
    %232 = vector.extract_strided_slice %224 {offsets = [7, 0], sizes = [1, 32], strides = [1, 1]} : vector<8x128xf32> to vector<1x32xf32>
    %cst_76 = arith.constant dense<0.000000e+00> : vector<16x96xf32>
    %233 = tpu.matmul %214, %216, %cst_76 {dimension_numbers = #tpu.dot_dimension_numbers<[1], [0], [0], [1], [0, 0, 1, 1], [], []>} : vector<16x32xf32>, vector<32x96xf32>, vector<16x96xf32> -> vector<16x96xf32>
    %234 = vector.broadcast %225 : vector<1x96xf32> to vector<16x96xf32>
    %235 = arith.addf %233, %234 : vector<16x96xf32>
    %236 = vector.extract_strided_slice %235 {offsets = [0, 0], sizes = [16, 8], strides = [1, 1]} : vector<16x96xf32> to vector<16x8xf32>
    %237 = vector.shape_cast %236 : vector<16x8xf32> to vector<2x8x8xf32>
    %238 = vector.extract_strided_slice %235 {offsets = [0, 32], sizes = [16, 8], strides = [1, 1]} : vector<16x96xf32> to vector<16x8xf32>
    %239 = vector.shape_cast %238 : vector<16x8xf32> to vector<2x8x8xf32>
    %240 = vector.extract_strided_slice %235 {offsets = [0, 64], sizes = [16, 8], strides = [1, 1]} : vector<16x96xf32> to vector<16x8xf32>
    %241 = vector.shape_cast %240 : vector<16x8xf32> to vector<2x8x8xf32>
    "tpu.trace_start"() <{level = 10 : i32, message = "bqd,bkd->bqk"}> : () -> ()
    %cst_77 = arith.constant dense<0.000000e+00> : vector<2x8x8xf32>
    %242 = tpu.matmul %237, %239, %cst_77 {dimension_numbers = #tpu.dot_dimension_numbers<[2], [2], [1], [1], [0, 0, 0, 1, 1, 1], [0], [0]>} : vector<2x8x8xf32>, vector<2x8x8xf32>, vector<2x8x8xf32> -> vector<2x8x8xf32>
    "tpu.trace_stop"() : () -> ()
    %cst_78 = arith.constant 0.353553385 : f32
    %243 = vector.broadcast %cst_78 : f32 to vector<2x8x8xf32>
    %244 = arith.mulf %242, %243 : vector<2x8x8xf32>
    %245 = vector.broadcast %36 : vector<2x1x8xf32> to vector<2x8x8xf32>
    %246 = arith.addf %244, %245 : vector<2x8x8xf32>
    %cst_79 = arith.constant dense<0xFF800000> : vector<2x8xf32>
    %247 = vector.multi_reduction <maximumf>, %246, %cst_79 [2] : vector<2x8x8xf32> to vector<2x8xf32>
    %248 = vector.shape_cast %247 : vector<2x8xf32> to vector<2x8x1xf32>
    %249 = vector.broadcast %248 : vector<2x8x1xf32> to vector<2x8x8xf32>
    %250 = arith.subf %246, %249 : vector<2x8x8xf32>
    %251 = math.exp %250 : vector<2x8x8xf32>
    %cst_80 = arith.constant dense<0.000000e+00> : vector<2x8xf32>
    %252 = vector.multi_reduction <add>, %251, %cst_80 [2] : vector<2x8x8xf32> to vector<2x8xf32>
    %253 = vector.shape_cast %252 : vector<2x8xf32> to vector<2x8x1xf32>
    %254 = vector.broadcast %253 : vector<2x8x1xf32> to vector<2x8x8xf32>
    %255 = arith.divf %251, %254 : vector<2x8x8xf32>
    "tpu.trace_start"() <{level = 10 : i32, message = "bqk,bkd->bqd"}> : () -> ()
    %cst_81 = arith.constant dense<0.000000e+00> : vector<2x8x8xf32>
    %256 = tpu.matmul %255, %241, %cst_81 {dimension_numbers = #tpu.dot_dimension_numbers<[2], [1], [1], [2], [0, 0, 0, 1, 1, 2], [0], [0]>} : vector<2x8x8xf32>, vector<2x8x8xf32>, vector<2x8x8xf32> -> vector<2x8x8xf32>
    "tpu.trace_stop"() : () -> ()
    %257 = vector.shape_cast %256 : vector<2x8x8xf32> to vector<16x8xf32>
    %258 = vector.extract_strided_slice %235 {offsets = [0, 8], sizes = [16, 8], strides = [1, 1]} : vector<16x96xf32> to vector<16x8xf32>
    %259 = vector.shape_cast %258 : vector<16x8xf32> to vector<2x8x8xf32>
    %260 = vector.extract_strided_slice %235 {offsets = [0, 40], sizes = [16, 8], strides = [1, 1]} : vector<16x96xf32> to vector<16x8xf32>
    %261 = vector.shape_cast %260 : vector<16x8xf32> to vector<2x8x8xf32>
    %262 = vector.extract_strided_slice %235 {offsets = [0, 72], sizes = [16, 8], strides = [1, 1]} : vector<16x96xf32> to vector<16x8xf32>
    %263 = vector.shape_cast %262 : vector<16x8xf32> to vector<2x8x8xf32>
    "tpu.trace_start"() <{level = 10 : i32, message = "bqd,bkd->bqk"}> : () -> ()
    %cst_82 = arith.constant dense<0.000000e+00> : vector<2x8x8xf32>
    %264 = tpu.matmul %259, %261, %cst_82 {dimension_numbers = #tpu.dot_dimension_numbers<[2], [2], [1], [1], [0, 0, 0, 1, 1, 1], [0], [0]>} : vector<2x8x8xf32>, vector<2x8x8xf32>, vector<2x8x8xf32> -> vector<2x8x8xf32>
    "tpu.trace_stop"() : () -> ()
    %cst_83 = arith.constant 0.353553385 : f32
    %265 = vector.broadcast %cst_83 : f32 to vector<2x8x8xf32>
    %266 = arith.mulf %264, %265 : vector<2x8x8xf32>
    %267 = vector.broadcast %36 : vector<2x1x8xf32> to vector<2x8x8xf32>
    %268 = arith.addf %266, %267 : vector<2x8x8xf32>
    %cst_84 = arith.constant dense<0xFF800000> : vector<2x8xf32>
    %269 = vector.multi_reduction <maximumf>, %268, %cst_84 [2] : vector<2x8x8xf32> to vector<2x8xf32>
    %270 = vector.shape_cast %269 : vector<2x8xf32> to vector<2x8x1xf32>
    %271 = vector.broadcast %270 : vector<2x8x1xf32> to vector<2x8x8xf32>
    %272 = arith.subf %268, %271 : vector<2x8x8xf32>
    %273 = math.exp %272 : vector<2x8x8xf32>
    %cst_85 = arith.constant dense<0.000000e+00> : vector<2x8xf32>
    %274 = vector.multi_reduction <add>, %273, %cst_85 [2] : vector<2x8x8xf32> to vector<2x8xf32>
    %275 = vector.shape_cast %274 : vector<2x8xf32> to vector<2x8x1xf32>
    %276 = vector.broadcast %275 : vector<2x8x1xf32> to vector<2x8x8xf32>
    %277 = arith.divf %273, %276 : vector<2x8x8xf32>
    "tpu.trace_start"() <{level = 10 : i32, message = "bqk,bkd->bqd"}> : () -> ()
    %cst_86 = arith.constant dense<0.000000e+00> : vector<2x8x8xf32>
    %278 = tpu.matmul %277, %263, %cst_86 {dimension_numbers = #tpu.dot_dimension_numbers<[2], [1], [1], [2], [0, 0, 0, 1, 1, 2], [0], [0]>} : vector<2x8x8xf32>, vector<2x8x8xf32>, vector<2x8x8xf32> -> vector<2x8x8xf32>
    "tpu.trace_stop"() : () -> ()
    %279 = vector.shape_cast %278 : vector<2x8x8xf32> to vector<16x8xf32>
    %280 = vector.extract_strided_slice %235 {offsets = [0, 16], sizes = [16, 8], strides = [1, 1]} : vector<16x96xf32> to vector<16x8xf32>
    %281 = vector.shape_cast %280 : vector<16x8xf32> to vector<2x8x8xf32>
    %282 = vector.extract_strided_slice %235 {offsets = [0, 48], sizes = [16, 8], strides = [1, 1]} : vector<16x96xf32> to vector<16x8xf32>
    %283 = vector.shape_cast %282 : vector<16x8xf32> to vector<2x8x8xf32>
    %284 = vector.extract_strided_slice %235 {offsets = [0, 80], sizes = [16, 8], strides = [1, 1]} : vector<16x96xf32> to vector<16x8xf32>
    %285 = vector.shape_cast %284 : vector<16x8xf32> to vector<2x8x8xf32>
    "tpu.trace_start"() <{level = 10 : i32, message = "bqd,bkd->bqk"}> : () -> ()
    %cst_87 = arith.constant dense<0.000000e+00> : vector<2x8x8xf32>
    %286 = tpu.matmul %281, %283, %cst_87 {dimension_numbers = #tpu.dot_dimension_numbers<[2], [2], [1], [1], [0, 0, 0, 1, 1, 1], [0], [0]>} : vector<2x8x8xf32>, vector<2x8x8xf32>, vector<2x8x8xf32> -> vector<2x8x8xf32>
    "tpu.trace_stop"() : () -> ()
    %cst_88 = arith.constant 0.353553385 : f32
    %287 = vector.broadcast %cst_88 : f32 to vector<2x8x8xf32>
    %288 = arith.mulf %286, %287 : vector<2x8x8xf32>
    %289 = vector.broadcast %36 : vector<2x1x8xf32> to vector<2x8x8xf32>
    %290 = arith.addf %288, %289 : vector<2x8x8xf32>
    %cst_89 = arith.constant dense<0xFF800000> : vector<2x8xf32>
    %291 = vector.multi_reduction <maximumf>, %290, %cst_89 [2] : vector<2x8x8xf32> to vector<2x8xf32>
    %292 = vector.shape_cast %291 : vector<2x8xf32> to vector<2x8x1xf32>
    %293 = vector.broadcast %292 : vector<2x8x1xf32> to vector<2x8x8xf32>
    %294 = arith.subf %290, %293 : vector<2x8x8xf32>
    %295 = math.exp %294 : vector<2x8x8xf32>
    %cst_90 = arith.constant dense<0.000000e+00> : vector<2x8xf32>
    %296 = vector.multi_reduction <add>, %295, %cst_90 [2] : vector<2x8x8xf32> to vector<2x8xf32>
    %297 = vector.shape_cast %296 : vector<2x8xf32> to vector<2x8x1xf32>
    %298 = vector.broadcast %297 : vector<2x8x1xf32> to vector<2x8x8xf32>
    %299 = arith.divf %295, %298 : vector<2x8x8xf32>
    "tpu.trace_start"() <{level = 10 : i32, message = "bqk,bkd->bqd"}> : () -> ()
    %cst_91 = arith.constant dense<0.000000e+00> : vector<2x8x8xf32>
    %300 = tpu.matmul %299, %285, %cst_91 {dimension_numbers = #tpu.dot_dimension_numbers<[2], [1], [1], [2], [0, 0, 0, 1, 1, 2], [0], [0]>} : vector<2x8x8xf32>, vector<2x8x8xf32>, vector<2x8x8xf32> -> vector<2x8x8xf32>
    "tpu.trace_stop"() : () -> ()
    %301 = vector.shape_cast %300 : vector<2x8x8xf32> to vector<16x8xf32>
    %302 = vector.extract_strided_slice %235 {offsets = [0, 24], sizes = [16, 8], strides = [1, 1]} : vector<16x96xf32> to vector<16x8xf32>
    %303 = vector.shape_cast %302 : vector<16x8xf32> to vector<2x8x8xf32>
    %304 = vector.extract_strided_slice %235 {offsets = [0, 56], sizes = [16, 8], strides = [1, 1]} : vector<16x96xf32> to vector<16x8xf32>
    %305 = vector.shape_cast %304 : vector<16x8xf32> to vector<2x8x8xf32>
    %306 = vector.extract_strided_slice %235 {offsets = [0, 88], sizes = [16, 8], strides = [1, 1]} : vector<16x96xf32> to vector<16x8xf32>
    %307 = vector.shape_cast %306 : vector<16x8xf32> to vector<2x8x8xf32>
    "tpu.trace_start"() <{level = 10 : i32, message = "bqd,bkd->bqk"}> : () -> ()
    %cst_92 = arith.constant dense<0.000000e+00> : vector<2x8x8xf32>
    %308 = tpu.matmul %303, %305, %cst_92 {dimension_numbers = #tpu.dot_dimension_numbers<[2], [2], [1], [1], [0, 0, 0, 1, 1, 1], [0], [0]>} : vector<2x8x8xf32>, vector<2x8x8xf32>, vector<2x8x8xf32> -> vector<2x8x8xf32>
    "tpu.trace_stop"() : () -> ()
    %cst_93 = arith.constant 0.353553385 : f32
    %309 = vector.broadcast %cst_93 : f32 to vector<2x8x8xf32>
    %310 = arith.mulf %308, %309 : vector<2x8x8xf32>
    %311 = vector.broadcast %36 : vector<2x1x8xf32> to vector<2x8x8xf32>
    %312 = arith.addf %310, %311 : vector<2x8x8xf32>
    %cst_94 = arith.constant dense<0xFF800000> : vector<2x8xf32>
    %313 = vector.multi_reduction <maximumf>, %312, %cst_94 [2] : vector<2x8x8xf32> to vector<2x8xf32>
    %314 = vector.shape_cast %313 : vector<2x8xf32> to vector<2x8x1xf32>
    %315 = vector.broadcast %314 : vector<2x8x1xf32> to vector<2x8x8xf32>
    %316 = arith.subf %312, %315 : vector<2x8x8xf32>
    %317 = math.exp %316 : vector<2x8x8xf32>
    %cst_95 = arith.constant dense<0.000000e+00> : vector<2x8xf32>
    %318 = vector.multi_reduction <add>, %317, %cst_95 [2] : vector<2x8x8xf32> to vector<2x8xf32>
    %319 = vector.shape_cast %318 : vector<2x8xf32> to vector<2x8x1xf32>
    %320 = vector.broadcast %319 : vector<2x8x1xf32> to vector<2x8x8xf32>
    %321 = arith.divf %317, %320 : vector<2x8x8xf32>
    "tpu.trace_start"() <{level = 10 : i32, message = "bqk,bkd->bqd"}> : () -> ()
    %cst_96 = arith.constant dense<0.000000e+00> : vector<2x8x8xf32>
    %322 = tpu.matmul %321, %307, %cst_96 {dimension_numbers = #tpu.dot_dimension_numbers<[2], [1], [1], [2], [0, 0, 0, 1, 1, 2], [0], [0]>} : vector<2x8x8xf32>, vector<2x8x8xf32>, vector<2x8x8xf32> -> vector<2x8x8xf32>
    "tpu.trace_stop"() : () -> ()
    %323 = vector.shape_cast %322 : vector<2x8x8xf32> to vector<16x8xf32>
    %324 = tpu.concatenate %257, %279, %301, %323 in 1 : vector<16x8xf32>, vector<16x8xf32>, vector<16x8xf32>, vector<16x8xf32> -> vector<16x32xf32>
    %cst_97 = arith.constant dense<0.000000e+00> : vector<16x32xf32>
    %325 = tpu.matmul %324, %218, %cst_97 {dimension_numbers = #tpu.dot_dimension_numbers<[1], [0], [0], [1], [0, 0, 1, 1], [], []>} : vector<16x32xf32>, vector<32x32xf32>, vector<16x32xf32> -> vector<16x32xf32>
    %326 = vector.broadcast %226 : vector<1x32xf32> to vector<16x32xf32>
    %327 = arith.addf %325, %326 : vector<16x32xf32>
    %328 = arith.addf %214, %327 : vector<16x32xf32>
    %cst_98 = arith.constant dense<0.000000e+00> : vector<16xf32>
    %329 = vector.multi_reduction <add>, %328, %cst_98 [1] : vector<16x32xf32> to vector<16xf32>
    %330 = vector.shape_cast %329 : vector<16xf32> to vector<16x1xf32>
    %cst_99 = arith.constant 3.200000e+01 : f32
    %331 = vector.broadcast %cst_99 : f32 to vector<16x1xf32>
    %332 = arith.divf %330, %331 : vector<16x1xf32>
    %333 = arith.mulf %328, %328 : vector<16x32xf32>
    %cst_100 = arith.constant dense<0.000000e+00> : vector<16xf32>
    %334 = vector.multi_reduction <add>, %333, %cst_100 [1] : vector<16x32xf32> to vector<16xf32>
    %335 = vector.shape_cast %334 : vector<16xf32> to vector<16x1xf32>
    %cst_101 = arith.constant 3.200000e+01 : f32
    %336 = vector.broadcast %cst_101 : f32 to vector<16x1xf32>
    %337 = arith.divf %335, %336 : vector<16x1xf32>
    %338 = arith.mulf %332, %332 : vector<16x1xf32>
    %339 = arith.subf %337, %338 : vector<16x1xf32>
    %340 = vector.broadcast %332 : vector<16x1xf32> to vector<16x32xf32>
    %341 = arith.subf %328, %340 : vector<16x32xf32>
    %cst_102 = arith.constant 9.99999996E-13 : f32
    %342 = vector.broadcast %cst_102 : f32 to vector<16x1xf32>
    %343 = arith.addf %339, %342 : vector<16x1xf32>
    %344 = math.rsqrt %343 : vector<16x1xf32>
    %345 = vector.broadcast %344 : vector<16x1xf32> to vector<16x32xf32>
    %346 = arith.mulf %341, %345 : vector<16x32xf32>
    %347 = vector.broadcast %227 : vector<1x32xf32> to vector<16x32xf32>
    %348 = arith.mulf %346, %347 : vector<16x32xf32>
    %349 = vector.broadcast %228 : vector<1x32xf32> to vector<16x32xf32>
    %350 = arith.addf %348, %349 : vector<16x32xf32>
    %cst_103 = arith.constant dense<0.000000e+00> : vector<16x64xf32>
    %351 = tpu.matmul %350, %220, %cst_103 {dimension_numbers = #tpu.dot_dimension_numbers<[1], [0], [0], [1], [0, 0, 1, 1], [], []>} : vector<16x32xf32>, vector<32x64xf32>, vector<16x64xf32> -> vector<16x64xf32>
    %352 = vector.broadcast %229 : vector<1x64xf32> to vector<16x64xf32>
    %353 = arith.addf %351, %352 : vector<16x64xf32>
    %354 = arith.mulf %353, %353 : vector<16x64xf32>
    %355 = arith.mulf %353, %354 : vector<16x64xf32>
    %cst_104 = arith.constant 4.471500e-02 : f32
    %356 = vector.broadcast %cst_104 : f32 to vector<16x64xf32>
    %357 = arith.mulf %356, %355 : vector<16x64xf32>
    %358 = arith.addf %353, %357 : vector<16x64xf32>
    %cst_105 = arith.constant 0.797884583 : f32
    %359 = vector.broadcast %cst_105 : f32 to vector<16x64xf32>
    %360 = arith.mulf %359, %358 : vector<16x64xf32>
    %361 = math.tanh %360 : vector<16x64xf32>
    %cst_106 = arith.constant 1.000000e+00 : f32
    %362 = vector.broadcast %cst_106 : f32 to vector<16x64xf32>
    %363 = arith.addf %362, %361 : vector<16x64xf32>
    %cst_107 = arith.constant 5.000000e-01 : f32
    %364 = vector.broadcast %cst_107 : f32 to vector<16x64xf32>
    %365 = arith.mulf %364, %363 : vector<16x64xf32>
    %366 = arith.mulf %353, %365 : vector<16x64xf32>
    %cst_108 = arith.constant dense<0.000000e+00> : vector<16x32xf32>
    %367 = tpu.matmul %366, %222, %cst_108 {dimension_numbers = #tpu.dot_dimension_numbers<[1], [0], [0], [1], [0, 0, 1, 1], [], []>} : vector<16x64xf32>, vector<64x32xf32>, vector<16x32xf32> -> vector<16x32xf32>
    %368 = vector.broadcast %230 : vector<1x32xf32> to vector<16x32xf32>
    %369 = arith.addf %367, %368 : vector<16x32xf32>
    %370 = arith.addf %350, %369 : vector<16x32xf32>
    %cst_109 = arith.constant dense<0.000000e+00> : vector<16xf32>
    %371 = vector.multi_reduction <add>, %370, %cst_109 [1] : vector<16x32xf32> to vector<16xf32>
    %372 = vector.shape_cast %371 : vector<16xf32> to vector<16x1xf32>
    %cst_110 = arith.constant 3.200000e+01 : f32
    %373 = vector.broadcast %cst_110 : f32 to vector<16x1xf32>
    %374 = arith.divf %372, %373 : vector<16x1xf32>
    %375 = arith.mulf %370, %370 : vector<16x32xf32>
    %cst_111 = arith.constant dense<0.000000e+00> : vector<16xf32>
    %376 = vector.multi_reduction <add>, %375, %cst_111 [1] : vector<16x32xf32> to vector<16xf32>
    %377 = vector.shape_cast %376 : vector<16xf32> to vector<16x1xf32>
    %cst_112 = arith.constant 3.200000e+01 : f32
    %378 = vector.broadcast %cst_112 : f32 to vector<16x1xf32>
    %379 = arith.divf %377, %378 : vector<16x1xf32>
    %380 = arith.mulf %374, %374 : vector<16x1xf32>
    %381 = arith.subf %379, %380 : vector<16x1xf32>
    %382 = vector.broadcast %374 : vector<16x1xf32> to vector<16x32xf32>
    %383 = arith.subf %370, %382 : vector<16x32xf32>
    %cst_113 = arith.constant 9.99999996E-13 : f32
    %384 = vector.broadcast %cst_113 : f32 to vector<16x1xf32>
    %385 = arith.addf %381, %384 : vector<16x1xf32>
    %386 = math.rsqrt %385 : vector<16x1xf32>
    %387 = vector.broadcast %386 : vector<16x1xf32> to vector<16x32xf32>
    %388 = arith.mulf %383, %387 : vector<16x32xf32>
    %389 = vector.broadcast %231 : vector<1x32xf32> to vector<16x32xf32>
    %390 = arith.mulf %388, %389 : vector<16x32xf32>
    %391 = vector.broadcast %232 : vector<1x32xf32> to vector<16x32xf32>
    %392 = arith.addf %390, %391 : vector<16x32xf32>
    %393 = vector.extract_strided_slice %392 {offsets = [0, 0], sizes = [1, 32], strides = [1, 1]} : vector<16x32xf32> to vector<1x32xf32>
    %394 = vector.extract_strided_slice %392 {offsets = [8, 0], sizes = [1, 32], strides = [1, 1]} : vector<16x32xf32> to vector<1x32xf32>
    %395 = tpu.concatenate %393, %394 in 0 : vector<1x32xf32>, vector<1x32xf32> -> vector<2x32xf32>
    %c152 = arith.constant 152 : index
    %c0_114 = arith.constant 0 : index
    %396 = vector.load %arg2[%c152, %c0_114] : memref<184x128xf32, #tpu.memory_space<vmem>>, vector<32x128xf32>
    %397 = vector.extract_strided_slice %11 {offsets = [2, 0], sizes = [1, 128], strides = [1, 1]} : vector<8x128xf32> to vector<1x128xf32>
    %cst_115 = arith.constant dense<0.000000e+00> : vector<2x128xf32>
    %398 = tpu.matmul %395, %396, %cst_115 {dimension_numbers = #tpu.dot_dimension_numbers<[1], [0], [0], [1], [0, 0, 1, 1], [], []>} : vector<2x32xf32>, vector<32x128xf32>, vector<2x128xf32> -> vector<2x128xf32>
    %399 = vector.broadcast %397 : vector<1x128xf32> to vector<2x128xf32>
    %400 = arith.addf %398, %399 : vector<2x128xf32>
    %c0_116 = arith.constant 0 : index
    %c0_117 = arith.constant 0 : index
    %401 = vector.load %arg4[%c0_116, %c0_117] : memref<2x128xf32, #tpu.memory_space<vmem>>, vector<2x128xf32>
    tpu.vector_store %arg4[%c0_116, %c0_117], %400 {strides = array<i32>} : memref<2x128xf32, #tpu.memory_space<vmem>>, vector<2x128xf32>,
    return
  }
}

</mosaic_0001>

<bundles_post_ra>
// kernel: mini_tag_transformer.1
= control target key start
LH: loop header
LB: loop body
LE: loop exit
PB: predicated region body
PF: predicated region fallthrough
CT: control target
= control target key end

     0   :  { %9 = vsyncpa [#allocation3], 0  ;;  %s5388_s0 = inlined_call_operand.vmem [shape: s32[16,1], index: 0, kind: input, shape index: {}]   ;;  %s5389_s1 = inlined_call_operand.vmem [shape: f32[2,1,8], index: 1, kind: input, shape index: {}]   ;;  %s5390_s2 = inlined_call_operand.hbm [shape: f32[184,128], index: 2, kind: input, shape index: {}]   ;;  %s5391_s3 = inlined_call_operand.hbm [shape: f32[2,168,128], index: 3, kind: input, shape index: {}]   ;;  %s5392_s4 = inlined_call_operand.hbm [shape: f32[2,128], index: 4, kind: output, shape index: {}]  }
   0x1   :  { %10 = vsyncpa [#allocation6], 0 }
   0x2   :  { %11 = vsyncpa [#allocation4], 0  ;;  %s4816_s15 = smov [#allocation2]   ;;  %s4744_s19 = scalar_lea.hbm %s5390_s2, 2944 }
   0x3   :  { %s21_s16 = sshll.u32 %s4816_s15, 4  ;;  %p4745_p0 = scmp.ne.s32.totalorder %s5390_s2, %s4744_s19  ;;  %s22_s16 = int_to_ptr.vmem [resolvable:$true] %s21_s16 }
   0x4   :  { %p4748_p1 = scmp.lt.u32.totalorder %s4744_s19, %s5390_s2 }
   0x6   :  { %p4750_p2 = pnand %p4748_p1, %p4745_p0 }
   0x8   :  { %4753 = shalt.err (!%p4750_p2)
}
   0x9   :  { %s4754_s24 = scalar_lea.vmem %s22_s16, 2944  ;;  %p4759_p4 = scmp.lt.s32.totalorder %s22_s16, %s22_s16 }
   0xa   :  { %p4755_p3 = scmp.ne.s32.totalorder %s22_s16, %s4754_s24  ;;  %p4760_p5 = scmp.lt.s32.totalorder %s4754_s24, %s4754_s24 }
   0xc   :  { %p4761_p6 = por %p4760_p5, %p4759_p4 }
   0xe   :  { %p4762_p7 = pnand %p4761_p6, %p4755_p3 }
  0x10   :  { %4765 = shalt.err (!%p4762_p7)
}
  0x11   :  { %s4817_s25 = smov 128   ;;  %s4818_s26 = smov 8  }
  0x12   :  { %27 = dma.hbm_to_vmem [thread:$0]  %s5390_s2, 2944, %s22_s16, [#allocation3], %s4817_s25, %s4817_s25, %s4818_s26  }
  0x13   :  { %s4819_s29 = smov [#allocation5]   ;;  %s4766_s7 = scalar_lea.hbm %s5391_s3, 5376 }
  0x14   :  { %s33_s30 = sshll.u32 %s4819_s29, 4  ;;  %p4767_p8 = scmp.ne.s32.totalorder %s5391_s3, %s4766_s7  ;;  %s34_s30 = int_to_ptr.vmem [resolvable:$true] %s33_s30 }
  0x15   :  { %p4770_p9 = scmp.lt.u32.totalorder %s4766_s7, %s5391_s3 }
  0x17   :  { %p4772_p10 = pnand %p4770_p9, %p4767_p8 }
  0x19   :  { %4775 = shalt.err (!%p4772_p10)
}
  0x1a   :  { %s4776_s12 = scalar_lea.vmem %s34_s30, 5376  ;;  %p4781_p12 = scmp.lt.s32.totalorder %s34_s30, %s34_s30 }
  0x1b   :  { %p4777_p11 = scmp.ne.s32.totalorder %s34_s30, %s4776_s12  ;;  %p4782_p13 = scmp.lt.s32.totalorder %s4776_s12, %s4776_s12 }
  0x1d   :  { %p4783_p0 = por %p4782_p13, %p4781_p12 }
  0x1f   :  { %p4784_p1 = pnand %p4783_p0, %p4777_p11 }
  0x21   :  { %4787 = shalt.err (!%p4784_p1)
}
  0x22   :  { %39 = dma.hbm_to_vmem [thread:$0]  %s5391_s3, 5376, %s34_s30, [#allocation6], %s4817_s25, %s4817_s25, %s4818_s26  }
  0x23   :  { %4810 = dma.done.wait [#allocation3], 2944  }
  0x24   :  { %4811 = vsyncadd [#allocation3], 4294964352 }
  0x25   :  { %4812 = dma.done.wait [#allocation6], 5376  }
  0x26   :  { %4813 = vsyncadd [#allocation6], 4294961920  ;;  %v4820_v0 = vmov 0   ;;  %v46_v1 = vld [vmem:[%s5388_s0] sm:$0xff]  ;;  %v63_v3 = vld [vmem:[#allocation2 + $0x8] sm:$0xff]  ;;  %v48_v27 = vlaneseq  ;;  %v4821_v30 = vmov 1.0  }
  0x27   :  { %4648 = vset.pattern.permute.xlu0 %v4820_v0  ;;  %v62_v2 = vld [vmem:[#allocation2] sm:$0xff]  ;;  %v64_v4 = vld [vmem:[#allocation2 + $0x10] sm:$0xff]  ;;  %v65_v5 = vld [vmem:[#allocation2 + $0x18] sm:$0xff]  ;;  %vm155_vm2 = vcmask 261120   ;;  %vm4823_vm3 = vmmov 0   ;;  %vm310_vm4 = vcmask 64512  }
  0x28   :  { %51 = vperm.xlu0 %4648, %v46_v1   ;;  %v47_v6 = vld [vmem:[%s5388_s0 + $0x8] sm:$0xff]  ;;  %v4507_v7 = vpack.c.bf16 %v63_v3, %v62_v2  ;;  %v4511_v8 = vpack.c.bf16 %v65_v5, %v64_v4  ;;  %v66_v9 = vld [vmem:[#allocation2 + $0x20] sm:$0xff]  ;;  %v68_v12 = vld [vmem:[#allocation2 + $0x30] sm:$0xff]  ;;  %v49_v28 = vand.u32 127, %v48_v27  ;;  %v4900_v63 = vshrl.u32 %v48_v27, 7  ;;  %s4824_s0 = smov 96  }
  0x29   :  { %v67_v10 = vld [vmem:[#allocation2 + $0x28] sm:$0xff]  ;;  %v69_v13 = vld [vmem:[#allocation2 + $0x38] sm:$0xff]  ;;  %v70_v15 = vld [vmem:[#allocation2 + $0x40] sm:$0xff]  ;;  %s4825_s21 = smov 64   ;;  %s4826_s22 = smov 88   ;;  %vm1683_vm5 = vcmask 195584  }
  0x2a   :  { %4508 = vmatprep.subr.bf16.mxu0 %v4507_v7  ;;  %v4515_v11 = vpack.c.bf16 %v67_v10, %v66_v9  ;;  %v4519_v14 = vpack.c.bf16 %v69_v13, %v68_v12  ;;  %v71_v16 = vld [vmem:[#allocation2 + $0x48] sm:$0xff]  ;;  %v72_v18 = vld [vmem:[#allocation2 + $0x50] sm:$0xff]  ;;  %v73_v19 = vld [vmem:[#allocation2 + $0x58] sm:$0xff]  ;;  %v4903_v0 = vsub.s32 0, %v4900_v63  ;;  %v4906_v2 = vsub.s32 1, %v4900_v63  ;;  %s4827_s23 = smov 120  }
  0x2b   :  { %4510 = vmatpush3.bf16.msra.mxu0 %v4507_v7  ;;  %v4523_v17 = vpack.c.bf16 %v71_v16, %v70_v15  ;;  %v4527_v20 = vpack.c.bf16 %v73_v19, %v72_v18  ;;  %v74_v21 = vld [vmem:[#allocation2 + $0x60] sm:$0xff]  ;;  %v75_v22 = vld [vmem:[#allocation2 + $0x68] sm:$0xff]  ;;  %v76_v24 = vld [vmem:[#allocation2 + $0x70] sm:$0xff]  ;;  %v4822_v15 = vmov 0.0   ;;  %s4828_s24 = smov 56   ;;  %s4829_s25 = smov 80  }
  0x2c   :  { %54 = vperm.xlu0 %4648, %v47_v6   ;;  %4512 = vmatprep.subr.bf16.mxu0 %v4511_v8  ;;  %v4531_v23 = vpack.c.bf16 %v75_v22, %v74_v21  ;;  %v77_v25 = vld [vmem:[#allocation2 + $0x78] sm:$0xff]  ;;  %v78_v32 = vld [vmem:[#allocation2 + $0x80] sm:$0xff]  ;;  %v203_v45 = vld [vmem:[#allocation5 + $0x10] sm:$0xff]  ;;  %s4830_s27 = smov 112   ;;  %s4831_s28 = smov 48   ;;  %vm1680_vm6 = vcmask 130048  }
  0x2d   :  { %v4535_v26 = vpack.c.bf16 %v77_v25, %v76_v24  ;;  %v201_v43 = vld [vmem:[#allocation5] sm:$0xff]  ;;  %v202_v44 = vld [vmem:[#allocation5 + $0x8] sm:$0xff]  ;;  %v204_v47 = vld [vmem:[#allocation5 + $0x18] sm:$0xff]  ;;  %s4832_s29 = smov 72   ;;  %s4833_s30 = smov 104   ;;  %vm1922_vm7 = vcmask 523264  }
  0x2e   :  { %v4539_v46 = vpack.c.bf16 %v202_v44, %v201_v43  ;;  %v4543_v48 = vpack.c.bf16 %v204_v47, %v203_v45  ;;  %v154_v1 = vld [vmem:[#allocation2 + $0x90] sm:$0xff]  ;;  %v4924_v16 = vld [vmem:[#allocation5 + $0xa0] sm:$0xff]  ;;  %v4951_v25 = vld [vmem:[%s5389_s1] ss:$0 sm:$0xff]  ;;  %s4834_s5 = smov 40   ;;  %s4835_s6 = smov 16  }
  0x2f   :  { %4514 = vmatpush3.bf16.msra.mxu0 %v4511_v8  ;;  %v190_v4 = vrot.slane %v154_v1, %v4903_v0  ;;  %v196_v8 = vrot.slane %v154_v1, %v4906_v2  ;;  %s4836_s7 = smov 24   ;;  %vm3883_vm8 = vcmask 1040384  }
  0x30   :  { %4516 = vmatprep.subr.bf16.mxu0 %v4515_v11  ;;  %4540 = vmatprep.subr.bf16.mxu1 %v4539_v46 }
  0x31   :  { %4542 = vmatpush3.bf16.msra.mxu1 %v4539_v46 }
  0x32   :  { %4544 = vmatprep.subr.bf16.mxu1 %v4543_v48 }
  0x33   :  { %4518 = vmatpush3.bf16.msra.mxu0 %v4515_v11 }
  0x34   :  { %4520 = vmatprep.subr.bf16.mxu0 %v4519_v14 }
  0x35   :  { %4546 = vmatpush3.bf16.msra.mxu1 %v4543_v48 }
  0x36   :  { %4243 = vmatprep.subr.mxu1 %v4822_v15 }
  0x37   :  { %4522 = vmatpush3.bf16.msra.mxu0 %v4519_v14 }
  0x38   :  { %4524 = vmatprep.subr.bf16.mxu0 %v4523_v17 }
  0x3b   :  { %4526 = vmatpush3.bf16.msra.mxu0 %v4523_v17  ;;  %v225_v17 = vrot.slane %v4924_v16, %v4903_v0 }
  0x3c   :  { %4528 = vmatprep.subr.bf16.mxu0 %v4527_v20 }
  0x3f   :  { %4530 = vmatpush3.bf16.msra.mxu0 %v4527_v20 }
  0x40   :  { %4532 = vmatprep.subr.bf16.mxu0 %v4531_v23 }
  0x43   :  { %4534 = vmatpush3.bf16.msra.mxu0 %v4531_v23 }
  0x44   :  { %4536 = vmatprep.subr.bf16.mxu0 %v4535_v26 }
  0x47   :  { %4538 = vmatpush3.bf16.msra.mxu0 %v4535_v26 }
  0x48   :  { %4283 = vmatprep.subr.mxu0 %v4822_v15 }
  0xa7   :  { %v52_v29 = vpop.permute.xlu0 %51 }
  0xa8   :  { %vm56_vm0 = vcmp.eq.s32.totalorder %v49_v28, %v52_v29 }
  0xa9   :  { %4229 = vmatprep.mubr.msk.f32.mxu0 %vm56_vm0, %v4821_v30 }
  0xab   :  { %v55_v31 = vpop.permute.xlu0 %54 }
  0xac   :  { %vm57_vm1 = vcmp.eq.s32.totalorder %v49_v28, %v55_v31 }
  0xad   :  { %4230 = vmatmul.mubr.msk.f32.vlgmr.msra.gmra.mrb[0].mxu0 %vm57_vm1, %v4821_v30  ;;  %v4957_v30 = vld [vmem:[%s5389_s1 + $0x1] ss:$0 sm:$0xff] }
  0xae   :  { %4285 = vmatprep.mubr.msk.f32.mxu0 %vm4823_vm3, %v4822_v15 }
 0x180   :  { %v4231_v33 = vpop.f32.mrb[0].mxu0 }
 0x181   :  { %v151_v34 = vadd.f32 %v4231_v33, %v78_v32  ;;  %v145_v35 = vpop.f32.mrb[1].mxu0 }
 0x182   :  { %v146_v36 = vadd.f32 %v145_v35, %v78_v32 }
 0x183   :  { %v159_v37 = vsel %vm155_vm2, %v151_v34, 0.0  ;;  %v166_v41 = vmul.f32 %v151_v34, %v151_v34 }
 0x184   :  { %160 = vadd.xlane.f32.xlu1 %v159_v37  ;;  %v165_v38 = vmul.f32 %v146_v36, %v146_v36  ;;  %v156_v40 = vsel %vm155_vm2, %v146_v36, 0.0 }
 0x185   :  { %v170_v42 = vsel %vm155_vm2, %v166_v41, 0.0 }
 0x186   :  { %v167_v39 = vsel %vm155_vm2, %v165_v38, 0.0 }
 0x187   :  { %168 = vadd.xlane.f32.xlu0 %v167_v39 }
 0x188   :  { %157 = vadd.xlane.f32.xlu1 %v156_v40 }
 0x18c   :  { %171 = vadd.xlane.f32.xlu1 %v170_v42 }
 0x211   :  { %v161_v49 = vpop.xlane.xlu1 %160 }
 0x212   :  { %v164_v52 = vmul.f32 0.03125, %v161_v49 }
 0x214   :  { %v169_v50 = vpop.xlane.xlu0 %168  ;;  %v176_v57 = vmul.f32 %v164_v52, %v164_v52  ;;  %v180_v6 = vsub.f32 %v151_v34, %v164_v52 }
 0x215   :  { %v158_v51 = vpop.xlane.xlu1 %157  ;;  %v173_v54 = vmul.f32 0.03125, %v169_v50 }
 0x216   :  { %v163_v53 = vmul.f32 0.03125, %v158_v51 }
 0x218   :  { %v175_v55 = vmul.f32 %v163_v53, %v163_v53  ;;  %v179_v3 = vsub.f32 %v146_v36, %v163_v53 }
 0x219   :  { %v172_v56 = vpop.xlane.xlu1 %171 }
 0x21a   :  { %v177_v58 = vsub.f32 %v173_v54, %v175_v55  ;;  %v174_v59 = vmul.f32 0.03125, %v172_v56 }
 0x21c   :  { %v181_v60 = vadd.f32 1e-12, %v177_v58  ;;  %v178_v61 = vsub.f32 %v174_v59, %v176_v57 }
 0x21e   :  { %4649 = vrsqrt.f32 %v181_v60  ;;  %v182_v62 = vadd.f32 1e-12, %v178_v61 }
 0x220   :  { %4651 = vrsqrt.f32 %v182_v62 }
 0x228   :  { %v4650_v5 = vpop.eup %4649 }
 0x229   :  { %v185_v7 = vmul.f32 %v4650_v5, %v179_v3 }
 0x22a   :  { %v4652_v9 = vpop.eup %4651 }
 0x22b   :  { %v186_v10 = vmul.f32 %v4652_v9, %v180_v6  ;;  %v191_v11 = vmul.f32 %v190_v4, %v185_v7 }
 0x22d   :  { %v192_v12 = vmul.f32 %v190_v4, %v186_v10  ;;  %v4910_v13 = vadd.f32 %v196_v8, %v191_v11 }
 0x22f   :  { %v4912_v14 = vadd.f32 %v196_v8, %v192_v12  ;;  %4240 = vmatprep.mubr.msk.f32.mxu1 %vm155_vm2, %v4910_v13 }
 0x231   :  { %4241 = vmatmul.mubr.msk.f32.vlgmr.msra.gmra.mrb[0].mxu1 %vm155_vm2, %v4912_v14 }
 0x232   :  { %4245 = vmatprep.mubr.msk.f32.mxu1 %vm4823_vm3, %v4822_v15 }
 0x304   :  { %v4242_v18 = vpop.f32.mrb[0].mxu1 }
 0x305   :  { %v298_v19 = vpop.f32.mrb[1].mxu1  ;;  %v4932_v21 = vadd.f32 %v4242_v18, %v225_v17 }
 0x306   :  { %v4928_v20 = vadd.f32 %v298_v19, %v225_v17 }
 0x308   :  { %308 = vrot.lane.b32.xlu1 %v4928_v20, %s4824_s0 }
 0x30c   :  { %386 = vrot.lane.b32.xlu1 %v4932_v21, %s4824_s0 }
 0x37a   :  { %v309_v22 = vpop.permute.xlu1 %308 }
 0x37b   :  { %4244 = vmatpush3.xpose.msk.msra.mxu1 %vm310_vm4, %v309_v22 }
 0x37c   :  { %4248 = vmatprep.subr.mxu1 %v4822_v15 }
 0x37e   :  { %4246 = vmatmul.mubr.msk.f32.vlgmr.msra.gmra.mrb[2].mxu1 %vm310_vm4, %v4928_v20  ;;  %v387_v23 = vpop.permute.xlu1 %386 }
 0x37f   :  { %4249 = vmatpush3.xpose.msk.msra.mxu1 %vm310_vm4, %v387_v23  ;;  %4250 = vmatprep.mubr.msk.f32.mxu1 %vm4823_vm3, %v4822_v15 }
 0x380   :  { %4253 = vmatprep.subr.mxu1 %v4822_v15 }
 0x382   :  { %4251 = vmatmul.mubr.msk.f32.vlgmr.msra.gmra.mrb[4].mxu1 %vm310_vm4, %v4932_v21 }
 0x383   :  { %4255 = vmatprep.mubr.msk.f32.mxu1 %vm4823_vm3, %v4822_v15 }
 0x451   :  { %v381_v24 = vpop.f32.mrb[2].mxu1 }
 0x452   :  { %v462_v26 = vmul.f32 0.35355338, %v381_v24  ;;  %v4247_v27 = vpop.f32.mrb[3].mxu1 }
 0x454   :  { %v476_v28 = vadd.f32 %v4951_v25, %v462_v26 }
 0x455   :  { %v458_v29 = vpop.f32.mrb[4].mxu1 }
 0x456   :  { %v463_v31 = vmul.f32 0.35355338, %v458_v29  ;;  %v4252_v32 = vpop.f32.mrb[5].mxu1  ;;  %v478_v33 = vsel %vm310_vm4, %v476_v28, -inf }
 0x457   :  { %479 = vmax.xlane.f32.xlu1 %v478_v33 }
 0x458   :  { %v477_v34 = vadd.f32 %v4957_v30, %v463_v31 }
 0x45a   :  { %v481_v35 = vsel %vm310_vm4, %v477_v34, -inf }
 0x45b   :  { %482 = vmax.xlane.f32.xlu0 %v481_v35 }
 0x468   :  { %576 = vrot.lane.b32.xlu1 %v4932_v21, %s4825_s21 }
 0x471   :  { %500 = vrot.lane.b32.xlu0 %v4928_v20, %s4825_s21 }
 0x475   :  { %654 = vrot.lane.b32.xlu0 %v4928_v20, %s4826_s22 }
 0x4e4   :  { %v480_v36 = vpop.xlane.xlu1 %479 }
 0x4e5   :  { %v484_v37 = vsub.f32 %v476_v28, %v480_v36 }
 0x4e7   :  { %v486_v38 = vmul.f32 1.442695, %v484_v37 }
 0x4e8   :  { %v483_v39 = vpop.xlane.xlu0 %482  ;;  %v577_v52 = vpop.permute.xlu1 %576 }
 0x4e9   :  { %4653 = vpow2.f32 %v486_v38  ;;  %v485_v40 = vsub.f32 %v477_v34, %v483_v39 }
 0x4eb   :  { %v488_v41 = vmul.f32 1.442695, %v485_v40 }
 0x4ec   :  { %v501_v42 = vpop.permute.xlu0 %500 }
 0x4ed   :  { %4655 = vpow2.f32 %v488_v41  ;;  %4254 = vmatpush3.msra.mxu1 %v501_v42 }
 0x4ee   :  { %4258 = vmatprep.subr.mxu1 %v4822_v15 }
 0x4f0   :  { %v655_v47 = vpop.permute.xlu0 %654 }
 0x4f3   :  { %v4654_v43 = vpop.eup %4653 }
 0x4f4   :  { %v490_v44 = vsel %vm310_vm4, %v4654_v43, 0.0 }
 0x4f5   :  { %491 = vadd.xlane.f32.xlu0 %v490_v44 }
 0x4f7   :  { %v4656_v45 = vpop.eup %4655 }
 0x4f8   :  { %v493_v46 = vsel %vm310_vm4, %v4656_v45, 0.0 }
 0x4f9   :  { %494 = vadd.xlane.f32.xlu0 %v493_v46 }
 0x50f   :  { %652 = vrot.lane.b32.xlu0 %v4928_v20, %s4827_s23 }
 0x513   :  { %732 = vrot.lane.b32.xlu0 %v4932_v21, %s4826_s22 }
 0x517   :  { %730 = vrot.lane.b32.xlu0 %v4932_v21, %s4827_s23 }
 0x582   :  { %v492_v48 = vpop.xlane.xlu0 %491 }
 0x583   :  { %4657 = vrcp.f32 %v492_v48 }
 0x586   :  { %v495_v49 = vpop.xlane.xlu0 %494 }
 0x587   :  { %4659 = vrcp.f32 %v495_v49 }
 0x58a   :  { %v653_v54 = vpop.permute.xlu0 %652 }
 0x58d   :  { %v4658_v50 = vpop.eup %4657 }
 0x58e   :  { %v497_v51 = vmul.f32 %v4658_v50, %v4654_v43  ;;  %v733_v56 = vpop.permute.xlu0 %732 }
 0x590   :  { %4256 = vmatmul.mubr.msk.f32.vlgmr.msra.gmra.mrb[6].mxu1 %vm310_vm4, %v497_v51 }
 0x591   :  { %v4660_v53 = vpop.eup %4659  ;;  %4259 = vmatpush3.msra.mxu1 %v577_v52  ;;  %4260 = vmatprep.mubr.msk.f32.mxu1 %vm4823_vm3, %v4822_v15 }
 0x592   :  { %v499_v55 = vmul.f32 %v4660_v53, %v4656_v45  ;;  %4263 = vmatprep.subr.mxu1 %v4822_v15  ;;  %v731_v57 = vpop.permute.xlu0 %730 }
 0x594   :  { %4261 = vmatmul.mubr.msk.f32.vlgmr.msra.gmra.mrb[8].mxu1 %vm310_vm4, %v499_v55 }
 0x595   :  { %4265 = vmatprep.mubr.msk.f32.mxu1 %vm4823_vm3, %v4822_v15 }
 0x598   :  { %4264 = vmatpush3.xpose.msk.msra.mxu1 %vm310_vm4, %v655_v47 }
 0x599   :  { %4268 = vmatprep.subr.mxu1 %v4822_v15 }
 0x59b   :  { %4266 = vmatmul.mubr.msk.f32.vlgmr.msra.gmra.mrb[10].mxu1 %vm310_vm4, %v653_v54 }
 0x59c   :  { %4269 = vmatpush3.xpose.msk.msra.mxu1 %vm310_vm4, %v733_v56  ;;  %4270 = vmatprep.mubr.msk.f32.mxu1 %vm4823_vm3, %v4822_v15 }
 0x59d   :  { %4273 = vmatprep.subr.mxu1 %v4822_v15 }
 0x59f   :  { %4271 = vmatmul.mubr.msk.f32.vlgmr.msra.gmra.mrb[12].mxu1 %vm310_vm4, %v731_v57 }
 0x5a0   :  { %4275 = vmatprep.mubr.msk.f32.mxu1 %vm4823_vm3, %v4822_v15 }
 0x663   :  { %v4994_v58 = vpop.f32.mrb[6].mxu1 }
 0x664   :  { %v4257_v59 = vpop.f32.mrb[7].mxu1 }
 0x667   :  { %v4996_v60 = vpop.f32.mrb[8].mxu1 }
 0x668   :  { %v4262_v61 = vpop.f32.mrb[9].mxu1 }
 0x66e   :  { %v726_v62 = vpop.f32.mrb[10].mxu1 }
 0x66f   :  { %v808_v1 = vmul.f32 0.35355338, %v726_v62  ;;  %v4267_v3 = vpop.f32.mrb[11].mxu1 }
 0x671   :  { %v810_v4 = vadd.f32 %v4951_v25, %v808_v1 }
 0x672   :  { %v804_v5 = vpop.f32.mrb[12].mxu1 }
 0x673   :  { %v809_v6 = vmul.f32 0.35355338, %v804_v5  ;;  %v4272_v7 = vpop.f32.mrb[13].mxu1  ;;  %v812_v8 = vsel %vm310_vm4, %v810_v4, -inf }
 0x674   :  { %813 = vmax.xlane.f32.xlu1 %v812_v8 }
 0x675   :  { %v811_v9 = vadd.f32 %v4957_v30, %v809_v6 }
 0x677   :  { %v815_v10 = vsel %vm310_vm4, %v811_v9, -inf }
 0x678   :  { %816 = vmax.xlane.f32.xlu0 %v815_v10 }
 0x685   :  { %910 = vrot.lane.b32.xlu1 %v4932_v21, %s4828_s24 }
 0x689   :  { %988 = vrot.lane.b32.xlu1 %v4928_v20, %s4829_s25 }
 0x701   :  { %v814_v11 = vpop.xlane.xlu1 %813 }
 0x702   :  { %v818_v12 = vsub.f32 %v810_v4, %v814_v11 }
 0x704   :  { %v820_v17 = vmul.f32 1.442695, %v818_v12 }
 0x705   :  { %v911_v18 = vpop.permute.xlu1 %910  ;;  %v817_v19 = vpop.xlane.xlu0 %816 }
 0x706   :  { %4661 = vpow2.f32 %v820_v17  ;;  %v819_v22 = vsub.f32 %v811_v9, %v817_v19 }
 0x708   :  { %v822_v23 = vmul.f32 1.442695, %v819_v22 }
 0x709   :  { %v989_v24 = vpop.permute.xlu1 %988 }
 0x70a   :  { %4663 = vpow2.f32 %v822_v23  ;;  %4284 = vmatpush3.xpose.msk.msra.mxu0 %vm310_vm4, %v989_v24 }
 0x70b   :  { %4293 = vmatprep.subr.mxu0 %v4822_v15 }
 0x710   :  { %v4662_v26 = vpop.eup %4661 }
 0x711   :  { %v824_v27 = vsel %vm310_vm4, %v4662_v26, 0.0 }
 0x712   :  { %825 = vadd.xlane.f32.xlu0 %v824_v27 }
 0x714   :  { %v4664_v28 = vpop.eup %4663 }
 0x715   :  { %v827_v29 = vsel %vm310_vm4, %v4664_v28, 0.0 }
 0x716   :  { %828 = vadd.xlane.f32.xlu1 %v827_v29 }
 0x727   :  { %986 = vrot.lane.b32.xlu1 %v4928_v20, %s4830_s27 }
 0x728   :  { %834 = vrot.lane.b32.xlu0 %v4928_v20, %s4828_s24 }
 0x72c   :  { %1066 = vrot.lane.b32.xlu0 %v4932_v21, %s4829_s25 }
 0x730   :  { %1064 = vrot.lane.b32.xlu0 %v4932_v21, %s4830_s27 }
 0x79f   :  { %v826_v31 = vpop.xlane.xlu0 %825 }
 0x7a0   :  { %4665 = vrcp.f32 %v826_v31 }
 0x7a3   :  { %v829_v32 = vpop.xlane.xlu1 %828  ;;  %v835_v33 = vpop.permute.xlu0 %834 }
 0x7a4   :  { %4667 = vrcp.f32 %v829_v32  ;;  %4274 = vmatpush3.msra.mxu1 %v835_v33 }
 0x7a5   :  { %4278 = vmatprep.subr.mxu1 %v4822_v15 }
 0x7a7   :  { %v987_v34 = vpop.permute.xlu1 %986  ;;  %v1067_v39 = vpop.permute.xlu0 %1066 }
 0x7a8   :  { %4286 = vmatmul.mubr.msk.f32.vlgmr.msra.gmra.mrb[2].mxu0 %vm310_vm4, %v987_v34 }
 0x7a9   :  { %4295 = vmatprep.mubr.msk.f32.mxu0 %vm4823_vm3, %v4822_v15 }
 0x7aa   :  { %v4666_v35 = vpop.eup %4665 }
 0x7ab   :  { %v831_v36 = vmul.f32 %v4666_v35, %v4662_v26  ;;  %v1065_v40 = vpop.permute.xlu0 %1064 }
 0x7ad   :  { %4276 = vmatmul.mubr.msk.f32.vlgmr.msra.gmra.mrb[14].mxu1 %vm310_vm4, %v831_v36 }
 0x7ae   :  { %v4668_v37 = vpop.eup %4667  ;;  %4279 = vmatpush3.msra.mxu1 %v911_v18  ;;  %4280 = vmatprep.mubr.msk.f32.mxu1 %vm4823_vm3, %v4822_v15 }
 0x7af   :  { %v833_v38 = vmul.f32 %v4668_v37, %v4664_v28  ;;  %4288 = vmatprep.subr.mxu1 %v4822_v15 }
 0x7b1   :  { %4281 = vmatmul.mubr.msk.f32.vlgmr.msra.gmra.mrb[16].mxu1 %vm310_vm4, %v833_v38 }
 0x7b2   :  { %4290 = vmatprep.mubr.msk.f32.mxu1 %vm4823_vm3, %v4822_v15 }
 0x7b5   :  { %4289 = vmatpush3.xpose.msk.msra.mxu1 %vm310_vm4, %v1067_v39 }
 0x7b6   :  { %4298 = vmatprep.subr.mxu1 %v4822_v15 }
 0x7b8   :  { %4291 = vmatmul.mubr.msk.f32.vlgmr.msra.gmra.mrb[18].mxu1 %vm310_vm4, %v1065_v40 }
 0x7b9   :  { %4300 = vmatprep.mubr.msk.f32.mxu1 %vm4823_vm3, %v4822_v15 }
 0x87b   :  { %v1060_v41 = vpop.f32.mrb[2].mxu0 }
 0x87c   :  { %v1142_v42 = vmul.f32 0.35355338, %v1060_v41  ;;  %v4287_v43 = vpop.f32.mrb[3].mxu0 }
 0x87e   :  { %v1144_v44 = vadd.f32 %v4951_v25, %v1142_v42 }
 0x880   :  { %v5035_v45 = vpop.f32.mrb[14].mxu1  ;;  %v1146_v46 = vsel %vm310_vm4, %v1144_v44, -inf }
 0x881   :  { %1147 = vmax.xlane.f32.xlu1 %v1146_v46  ;;  %v4277_v47 = vpop.f32.mrb[15].mxu1 }
 0x884   :  { %v5038_v48 = vpop.f32.mrb[16].mxu1 }
 0x885   :  { %v4282_v49 = vpop.f32.mrb[17].mxu1 }
 0x88b   :  { %v1138_v50 = vpop.f32.mrb[18].mxu1 }
 0x88c   :  { %v1143_v51 = vmul.f32 0.35355338, %v1138_v50  ;;  %v4292_v52 = vpop.f32.mrb[19].mxu1 }
 0x88e   :  { %v1145_v53 = vadd.f32 %v4957_v30, %v1143_v51 }
 0x890   :  { %v1149_v54 = vsel %vm310_vm4, %v1145_v53, -inf }
 0x891   :  { %1150 = vmax.xlane.f32.xlu0 %v1149_v54 }
 0x892   :  { %1244 = vrot.lane.b32.xlu1 %v4932_v21, %s4831_s28 }
 0x896   :  { %1322 = vrot.lane.b32.xlu1 %v4928_v20, %s4832_s29 }
 0x90e   :  { %v1148_v55 = vpop.xlane.xlu1 %1147 }
 0x90f   :  { %v1152_v56 = vsub.f32 %v1144_v44, %v1148_v55 }
 0x911   :  { %v1154_v57 = vmul.f32 1.442695, %v1152_v56 }
 0x912   :  { %v1245_v59 = vpop.permute.xlu1 %1244 }
 0x913   :  { %4669 = vpow2.f32 %v1154_v57  ;;  %4299 = vmatpush3.msra.mxu1 %v1245_v59  ;;  %v207_v59 = vld [vmem:[#allocation5 + $0x30] sm:$0xff] }
 0x914   :  { %4308 = vmatprep.subr.mxu1 %v4822_v15 }
 0x916   :  { %v1323_v10 = vpop.permute.xlu1 %1322 }
 0x91d   :  { %v4670_v61 = vpop.eup %4669 }
 0x91e   :  { %v1151_v62 = vpop.xlane.xlu0 %1150  ;;  %v1158_v1 = vsel %vm310_vm4, %v4670_v61, 0.0 }
 0x91f   :  { %v1153_v3 = vsub.f32 %v1145_v53, %v1151_v62  ;;  %1159 = vadd.xlane.f32.xlu0 %v1158_v1  ;;  %v208_v62 = vld [vmem:[#allocation5 + $0x38] sm:$0xff] }
 0x920   :  { %v4551_v1 = vpack.c.bf16 %v208_v62, %v207_v59 }
 0x921   :  { %v1156_v4 = vmul.f32 1.442695, %v1153_v3 }
 0x923   :  { %4671 = vpow2.f32 %v1156_v4 }
 0x92d   :  { %v4672_v5 = vpop.eup %4671 }
 0x92e   :  { %v1161_v6 = vsel %vm310_vm4, %v4672_v5, 0.0 }
 0x92f   :  { %1162 = vadd.xlane.f32.xlu1 %v1161_v6 }
 0x935   :  { %1168 = vrot.lane.b32.xlu0 %v4928_v20, %s4831_s28 }
 0x939   :  { %1400 = vrot.lane.b32.xlu0 %v4932_v21, %s4832_s29 }
 0x93d   :  { %1398 = vrot.lane.b32.xlu0 %v4932_v21, %s4833_s30 }
 0x940   :  { %1320 = vrot.lane.b32.xlu1 %v4928_v20, %s4833_s30 }
 0x9ac   :  { %v1160_v7 = vpop.xlane.xlu0 %1159 }
 0x9ad   :  { %4673 = vrcp.f32 %v1160_v7 }
 0x9b0   :  { %v1169_v8 = vpop.permute.xlu0 %1168 }
 0x9b1   :  { %4294 = vmatpush3.msra.mxu0 %v1169_v8 }
 0x9b2   :  { %4303 = vmatprep.subr.mxu0 %v4822_v15 }
 0x9b4   :  { %v1401_v19 = vpop.permute.xlu0 %1400 }
 0x9b7   :  { %v4674_v9 = vpop.eup %4673 }
 0x9b8   :  { %v1165_v11 = vmul.f32 %v4674_v9, %v4670_v61  ;;  %v1399_v23 = vpop.permute.xlu0 %1398 }
 0x9ba   :  { %4296 = vmatmul.mubr.msk.f32.vlgmr.msra.gmra.mrb[4].mxu0 %vm310_vm4, %v1165_v11 }
 0x9bb   :  { %4304 = vmatpush3.xpose.msk.msra.mxu0 %vm310_vm4, %v1323_v10  ;;  %4305 = vmatprep.mubr.msk.f32.mxu0 %vm4823_vm3, %v4822_v15 }
 0x9bc   :  { %v1163_v12 = vpop.xlane.xlu1 %1162  ;;  %4313 = vmatprep.subr.mxu0 %v4822_v15 }
 0x9bd   :  { %4675 = vrcp.f32 %v1163_v12 }
 0x9c0   :  { %v1321_v17 = vpop.permute.xlu1 %1320 }
 0x9c1   :  { %4306 = vmatmul.mubr.msk.f32.vlgmr.msra.gmra.mrb[6].mxu0 %vm310_vm4, %v1321_v17 }
 0x9c2   :  { %4315 = vmatprep.mubr.msk.f32.mxu0 %vm4823_vm3, %v4822_v15 }
 0x9c7   :  { %v4676_v18 = vpop.eup %4675 }
 0x9c8   :  { %v1167_v22 = vmul.f32 %v4676_v18, %v4672_v5 }
 0x9ca   :  { %4301 = vmatmul.mubr.msk.f32.vlgmr.msra.gmra.mrb[20].mxu1 %vm310_vm4, %v1167_v22 }
 0x9cb   :  { %4309 = vmatpush3.xpose.msk.msra.mxu1 %vm310_vm4, %v1401_v19  ;;  %4310 = vmatprep.mubr.msk.f32.mxu1 %vm4823_vm3, %v4822_v15 }
 0x9cc   :  { %4318 = vmatprep.subr.mxu1 %v4822_v15 }
 0x9ce   :  { %4311 = vmatmul.mubr.msk.f32.vlgmr.msra.gmra.mrb[22].mxu1 %vm310_vm4, %v1399_v23 }
 0x9cf   :  { %4320 = vmatprep.mubr.msk.f32.mxu1 %vm4823_vm3, %v4822_v15 }
 0xa8d   :  { %v1240_v24 = vpop.f32.mrb[4].mxu0 }
 0xa8e   :  { %v4297_v26 = vpop.f32.mrb[5].mxu0 }
 0xa94   :  { %v1394_v27 = vpop.f32.mrb[6].mxu0 }
 0xa95   :  { %v1476_v28 = vmul.f32 0.35355338, %v1394_v27  ;;  %v4307_v29 = vpop.f32.mrb[7].mxu0 }
 0xa97   :  { %v1478_v31 = vadd.f32 %v4951_v25, %v1476_v28 }
 0xa99   :  { %v1480_v32 = vsel %vm310_vm4, %v1478_v31, -inf }
 0xa9a   :  { %1481 = vmax.xlane.f32.xlu1 %v1480_v32 }
 0xa9d   :  { %v1316_v33 = vpop.f32.mrb[20].mxu1 }
 0xa9e   :  { %v4302_v34 = vpop.f32.mrb[21].mxu1 }
 0xaa1   :  { %v1472_v35 = vpop.f32.mrb[22].mxu1 }
 0xaa2   :  { %v1477_v36 = vmul.f32 0.35355338, %v1472_v35  ;;  %v4312_v37 = vpop.f32.mrb[23].mxu1 }
 0xaa4   :  { %v1479_v38 = vadd.f32 %v4957_v30, %v1477_v36 }
 0xaa6   :  { %v1483_v39 = vsel %vm310_vm4, %v1479_v38, -inf }
 0xaa7   :  { %1484 = vmax.xlane.f32.xlu0 %v1483_v39  ;;  %v210_v39 = vld [vmem:[#allocation5 + $0x48] sm:$0xff] }
 0xb27   :  { %v1482_v40 = vpop.xlane.xlu1 %1481 }
 0xb28   :  { %v1486_v41 = vsub.f32 %v1478_v31, %v1482_v40 }
 0xb2a   :  { %v1488_v42 = vmul.f32 1.442695, %v1486_v41 }
 0xb2c   :  { %4677 = vpow2.f32 %v1488_v42 }
 0xb34   :  { %v1485_v43 = vpop.xlane.xlu0 %1484 }
 0xb35   :  { %v1487_v44 = vsub.f32 %v1479_v38, %v1485_v43  ;;  %v209_v38 = vld [vmem:[#allocation5 + $0x40] sm:$0xff] }
 0xb36   :  { %v4678_v46 = vpop.eup %4677  ;;  %v4555_v40 = vpack.c.bf16 %v210_v39, %v209_v38 }
 0xb37   :  { %v1490_v47 = vmul.f32 1.442695, %v1487_v44  ;;  %v1492_v49 = vsel %vm310_vm4, %v4678_v46, 0.0 }
 0xb38   :  { %1493 = vadd.xlane.f32.xlu0 %v1492_v49 }
 0xb39   :  { %4679 = vpow2.f32 %v1490_v47 }
 0xb43   :  { %v4680_v50 = vpop.eup %4679 }
 0xb44   :  { %v1495_v51 = vsel %vm310_vm4, %v4680_v50, 0.0 }
 0xb45   :  { %1496 = vadd.xlane.f32.xlu1 %v1495_v51 }
 0xb4e   :  { %1502 = vrot.lane.b32.xlu0 %v4928_v20, %s4834_s5 }
 0xb52   :  { %1658 = vrot.lane.b32.xlu0 %v5038_v48, %s4818_s26 }
 0xb56   :  { %1666 = vrot.lane.b32.xlu0 %v1316_v33, %s4835_s6  ;;  %1578 = vrot.lane.b32.xlu1 %v4932_v21, %s4834_s5  ;;  %v205_v21 = vld [vmem:[#allocation5 + $0x20] sm:$0xff] }
 0xb5a   :  { %1656 = vrot.lane.b32.xlu1 %v5035_v45, %s4818_s26  ;;  %v206_v45 = vld [vmem:[#allocation5 + $0x28] sm:$0xff] }
 0xb5b   :  { %v4547_v61 = vpack.c.bf16 %v206_v45, %v205_v21 }
 0xb5e   :  { %1664 = vrot.lane.b32.xlu1 %v1240_v24, %s4835_s6 }
 0xbc5   :  { %v1494_v52 = vpop.xlane.xlu0 %1493 }
 0xbc6   :  { %4681 = vrcp.f32 %v1494_v52 }
 0xbc9   :  { %v1503_v53 = vpop.permute.xlu0 %1502 }
 0xbca   :  { %4314 = vmatpush3.msra.mxu0 %v1503_v53 }
 0xbcb   :  { %4548 = vmatprep.subr.bf16.mxu0 %v4547_v61 }
 0xbcd   :  { %v1659_v17 = vpop.permute.xlu0 %1658 }
 0xbce   :  { %v1679_v19 = vsel %vm310_vm4, %v4996_v60, %v1659_v17  ;;  %v216_v17 = vld [vmem:[#allocation5 + $0x78] sm:$0xff] }
 0xbd0   :  { %v4682_v54 = vpop.eup %4681 }
 0xbd1   :  { %v1499_v20 = vmul.f32 %v4682_v54, %v4678_v46  ;;  %v1667_v18 = vpop.permute.xlu0 %1666 }
 0xbd2   :  { %v1497_v55 = vpop.xlane.xlu1 %1496  ;;  %v1682_v22 = vsel %vm1680_vm6, %v1679_v19, %v1667_v18  ;;  %v217_v19 = vld [vmem:[#allocation5 + $0x80] sm:$0xff] }
 0xbd3   :  { %4683 = vrcp.f32 %v1497_v55  ;;  %4316 = vmatmul.mubr.msk.f32.vlgmr.msra.gmra.mrb[8].mxu0 %vm310_vm4, %v1499_v20 }
 0xbd4   :  { %4550 = vmatpush3.bf16.msra.mxu0 %v4547_v61 }
 0xbd5   :  { %4552 = vmatprep.subr.bf16.mxu0 %v4551_v1 }
 0xbd6   :  { %v1579_v48 = vpop.permute.xlu1 %1578 }
 0xbd7   :  { %4319 = vmatpush3.msra.mxu1 %v1579_v48 }
 0xbd8   :  { %4554 = vmatpush3.bf16.msra.mxu0 %v4551_v1  ;;  %4556 = vmatprep.subr.bf16.mxu1 %v4555_v40 }
 0xbda   :  { %v1657_v7 = vpop.permute.xlu1 %1656 }
 0xbdb   :  { %v1678_v9 = vsel %vm310_vm4, %v4994_v58, %v1657_v7  ;;  %v1689_v58 = vrot.slane %v4924_v16, %v4906_v2 }
 0xbdd   :  { %v4684_v56 = vpop.eup %4683 }
 0xbde   :  { %v1501_v57 = vmul.f32 %v4684_v56, %v4680_v50  ;;  %v1665_v8 = vpop.permute.xlu1 %1664  ;;  %v5113_v56 = vsub.s32 2, %v4900_v63 }
 0xbdf   :  { %v1681_v10 = vsel %vm1680_vm6, %v1678_v9, %v1665_v8  ;;  %v213_v9 = vld [vmem:[#allocation5 + $0x60] sm:$0xff] }
 0xbe0   :  { %4321 = vmatmul.mubr.msk.f32.vlgmr.msra.gmra.mrb[24].mxu1 %vm310_vm4, %v1501_v57  ;;  %v1811_v57 = vsub.s32 3, %v4900_v63  ;;  %v1806_v45 = vrot.slane %v4924_v16, %v5113_v56 }
 0xbe1   :  { %4558 = vmatpush3.bf16.msra.mxu1 %v4555_v40 }
 0xca6   :  { %v1574_v3 = vpop.f32.mrb[8].mxu0 }
 0xca7   :  { %1672 = vrot.lane.b32.xlu1 %v1574_v3, %s4836_s7  ;;  %v4317_v4 = vpop.f32.mrb[9].mxu0  ;;  %v1812_v3 = vrot.slane %v4924_v16, %v1811_v57 }
 0xcb3   :  { %v1650_v5 = vpop.f32.mrb[24].mxu1 }
 0xcb4   :  { %1674 = vrot.lane.b32.xlu0 %v1650_v5, %s4836_s7  ;;  %v4322_v6 = vpop.f32.mrb[25].mxu1 }
 0xd19   :  { %v1673_v11 = vpop.permute.xlu1 %1672 }
 0xd1a   :  { %v1684_v12 = vsel %vm1683_vm5, %v1681_v10, %v1673_v11  ;;  %v214_v10 = vld [vmem:[#allocation5 + $0x68] sm:$0xff] }
 0xd1b   :  { %4331 = vmatprep.mubr.msk.f32.mxu0 %vm155_vm2, %v1684_v12  ;;  %v4563_v11 = vpack.c.bf16 %v214_v10, %v213_v9  ;;  %v215_v12 = vld [vmem:[#allocation5 + $0x70] sm:$0xff]  ;;  %v2051_v9 = vld [vmem:[#allocation5 + $0xb8] sm:$0xff] }
 0xd1c   :  { %v4567_v18 = vpack.c.bf16 %v216_v17, %v215_v12 }
 0xd1d   :  { %4564 = vmatprep.subr.bf16.mxu0 %v4563_v11 }
 0xd26   :  { %v1675_v23 = vpop.permute.xlu0 %1674 }
 0xd27   :  { %v1685_v24 = vsel %vm1683_vm5, %v1682_v22, %v1675_v23  ;;  %v218_v22 = vld [vmem:[#allocation5 + $0x88] sm:$0xff] }
 0xd28   :  { %4332 = vmatmul.mubr.msk.f32.vlgmr.msra.gmra.mrb[10].mxu0 %vm155_vm2, %v1685_v24  ;;  %v4571_v23 = vpack.c.bf16 %v218_v22, %v217_v19  ;;  %v219_v24 = vld [vmem:[#allocation5 + $0x90] sm:$0xff] }
 0xd29   :  { %4566 = vmatpush3.bf16.msra.mxu0 %v4563_v11 }
 0xd2a   :  { %4568 = vmatprep.subr.bf16.mxu0 %v4567_v18 }
 0xd2d   :  { %4570 = vmatpush3.bf16.msra.mxu0 %v4567_v18 }
 0xd2e   :  { %4572 = vmatprep.subr.bf16.mxu0 %v4571_v23 }
 0xd31   :  { %4574 = vmatpush3.bf16.msra.mxu0 %v4571_v23 }
 0xdfb   :  { %v4333_v26 = vpop.f32.mrb[10].mxu0 }
 0xdfc   :  { %v1768_v27 = vadd.f32 %v4333_v26, %v1689_v58  ;;  %v1762_v28 = vpop.f32.mrb[11].mxu0 }
 0xdfd   :  { %v1763_v29 = vadd.f32 %v1762_v28, %v1689_v58  ;;  %v220_v58 = vld [vmem:[#allocation5 + $0x98] sm:$0xff] }
 0xdfe   :  { %v1772_v31 = vadd.f32 %v1768_v27, %v4912_v14  ;;  %v212_v14 = vld [vmem:[#allocation5 + $0x58] sm:$0xff]  ;;  %v4575_v26 = vpack.c.bf16 %v220_v58, %v219_v24  ;;  %v1817_v27 = vsub.s32 4, %v4900_v63 }
 0xdff   :  { %v1771_v32 = vadd.f32 %v1763_v29, %v4910_v13  ;;  %v211_v13 = vld [vmem:[#allocation5 + $0x50] sm:$0xff] }
 0xe00   :  { %v1776_v60 = vsel %vm155_vm2, %v1772_v31, 0.0  ;;  %v1782_v35 = vmul.f32 %v1772_v31, %v1772_v31  ;;  %v4559_v41 = vpack.c.bf16 %v212_v14, %v211_v13  ;;  %4576 = vmatprep.subr.bf16.mxu0 %v4575_v26  ;;  %v1818_v28 = vrot.slane %v4924_v16, %v1817_v27 }
 0xe01   :  { %1777 = vadd.xlane.f32.xlu0 %v1776_v60  ;;  %v1773_v33 = vsel %vm155_vm2, %v1771_v32, 0.0  ;;  %v1781_v34 = vmul.f32 %v1771_v32, %v1771_v32  ;;  %4578 = vmatpush3.bf16.msra.mxu0 %v4575_v26 }
 0xe02   :  { %1774 = vadd.xlane.f32.xlu1 %v1773_v33  ;;  %v1786_v37 = vsel %vm155_vm2, %v1782_v35, 0.0  ;;  %4560 = vmatprep.subr.bf16.mxu1 %v4559_v41 }
 0xe03   :  { %v1783_v36 = vsel %vm155_vm2, %v1781_v34, 0.0  ;;  %4562 = vmatpush3.bf16.msra.mxu1 %v4559_v41  ;;  %4385 = vmatprep.subr.mxu0 %v4822_v15 }
 0xe05   :  { %1784 = vadd.xlane.f32.xlu0 %v1783_v36 }
 0xe06   :  { %1787 = vadd.xlane.f32.xlu1 %v1786_v37 }
 0xe8e   :  { %v1778_v42 = vpop.xlane.xlu0 %1777 }
 0xe8f   :  { %v1775_v43 = vpop.xlane.xlu1 %1774  ;;  %v1780_v44 = vmul.f32 0.03125, %v1778_v42 }
 0xe90   :  { %v1779_v46 = vmul.f32 0.03125, %v1775_v43 }
 0xe91   :  { %v1792_v52 = vmul.f32 %v1780_v44, %v1780_v44  ;;  %v1796_v61 = vsub.f32 %v1772_v31, %v1780_v44 }
 0xe92   :  { %v1791_v47 = vmul.f32 %v1779_v46, %v1779_v46  ;;  %v1785_v49 = vpop.xlane.xlu0 %1784  ;;  %v1795_v21 = vsub.f32 %v1771_v32, %v1779_v46 }
 0xe93   :  { %v1789_v50 = vmul.f32 0.03125, %v1785_v49  ;;  %v1788_v51 = vpop.xlane.xlu1 %1787 }
 0xe94   :  { %v1790_v53 = vmul.f32 0.03125, %v1788_v51  ;;  %v1920_v51 = vsub.s32 5, %v4900_v63 }
 0xe95   :  { %v1793_v54 = vsub.f32 %v1789_v50, %v1791_v47 }
 0xe96   :  { %v1794_v20 = vsub.f32 %v1790_v53, %v1792_v52  ;;  %v1921_v52 = vrot.slane %v4924_v16, %v1920_v51 }
 0xe97   :  { %v1797_v55 = vadd.f32 1e-12, %v1793_v54 }
 0xe98   :  { %v1798_v48 = vadd.f32 1e-12, %v1794_v20 }
 0xe99   :  { %4685 = vrsqrt.f32 %v1797_v55 }
 0xe9a   :  { %4687 = vrsqrt.f32 %v1798_v48 }
 0xea3   :  { %v4686_v59 = vpop.eup %4685 }
 0xea4   :  { %v4688_v62 = vpop.eup %4687  ;;  %v1801_v1 = vmul.f32 %v4686_v59, %v1795_v21 }
 0xea5   :  { %v1802_v4 = vmul.f32 %v4688_v62, %v1796_v61 }
 0xea6   :  { %v1807_v5 = vmul.f32 %v1806_v45, %v1801_v1 }
 0xea7   :  { %v1808_v6 = vmul.f32 %v1806_v45, %v1802_v4  ;;  %v2049_v4 = vld [vmem:[#allocation5 + $0xa8] sm:$0xff] }
 0xea8   :  { %v1813_v7 = vadd.f32 %v1812_v3, %v1807_v5  ;;  %v2050_v5 = vld [vmem:[#allocation5 + $0xb0] sm:$0xff] }
 0xea9   :  { %v1814_v8 = vadd.f32 %v1812_v3, %v1808_v6  ;;  %v4579_v6 = vpack.c.bf16 %v2050_v5, %v2049_v4 }
 0xeaa   :  { %4342 = vmatprep.mubr.msk.f32.mxu1 %vm155_vm2, %v1813_v7 }
 0xeab   :  { %4343 = vmatmul.mubr.msk.f32.vlgmr.msra.gmra.mrb[26].mxu1 %vm155_vm2, %v1814_v8  ;;  %4580 = vmatprep.subr.bf16.mxu1 %v4579_v6 }
 0xeac   :  { %4582 = vmatpush3.bf16.msra.mxu1 %v4579_v6 }
 0xf7e   :  { %v4344_v29 = vpop.f32.mrb[26].mxu1 }
 0xf7f   :  { %v1897_v31 = vadd.f32 %v4344_v29, %v1818_v28  ;;  %v1891_v32 = vpop.f32.mrb[27].mxu1 }
 0xf80   :  { %v1892_v60 = vadd.f32 %v1891_v32, %v1818_v28  ;;  %v2038_v32 = vsub.s32 6, %v4900_v63 }
 0xf81   :  { %v1901_v33 = vmul.f32 %v1897_v31, %v1897_v31 }
 0xf82   :  { %v1900_v34 = vmul.f32 %v1892_v60, %v1892_v60 }
 0xf83   :  { %v1903_v35 = vmul.f32 %v1901_v33, %v1897_v31 }
 0xf84   :  { %v1902_v36 = vmul.f32 %v1900_v34, %v1892_v60  ;;  %v2039_v34 = vrot.slane %v4924_v16, %v2038_v32 }
 0xf85   :  { %v1905_v37 = vmul.f32 0.044715, %v1903_v35 }
 0xf86   :  { %v1904_v38 = vmul.f32 0.044715, %v1902_v36 }
 0xf87   :  { %v1907_v39 = vadd.f32 %v1905_v37, %v1897_v31 }
 0xf88   :  { %v1906_v40 = vadd.f32 %v1904_v38, %v1892_v60 }
 0xf89   :  { %v1909_v13 = vmul.f32 0.7978846, %v1907_v39 }
 0xf8a   :  { %v1908_v14 = vmul.f32 0.7978846, %v1906_v40 }
 0xf8b   :  { %4689 = vtanh.f32 %v1909_v13 }
 0xf8c   :  { %4691 = vtanh.f32 %v1908_v14 }
 0xf95   :  { %v4690_v41 = vpop.eup %4689 }
 0xf96   :  { %v4692_v42 = vpop.eup %4691  ;;  %v1913_v43 = vadd.f32 1.0, %v4690_v41 }
 0xf97   :  { %v1912_v44 = vadd.f32 1.0, %v4692_v42 }
 0xf98   :  { %v1915_v46 = vmul.f32 0.5, %v1913_v43  ;;  %v5159_v43 = vld [vmem:[#allocation5 + $0x148] sm:$0xff] }
 0xf99   :  { %v1914_v47 = vmul.f32 0.5, %v1912_v44 }
 0xf9a   :  { %v1917_v50 = vmul.f32 %v1915_v46, %v1897_v31 }
 0xf9b   :  { %v1916_v49 = vmul.f32 %v1914_v47, %v1892_v60  ;;  %v2044_v60 = vsub.s32 7, %v4900_v63 }
 0xf9d   :  { %4361 = vmatprep.mubr.msk.f32.mxu0 %vm1922_vm7, %v1916_v49  ;;  %v2045_v40 = vrot.slane %v4924_v16, %v2044_v60  ;;  %v2073_v16 = vrot.slane %v5159_v43, %v4903_v0 }
 0xf9e   :  { %4362 = vmatmul.mubr.msk.f32.vlgmr.msra.gmra.mrb[12].mxu0 %vm1922_vm7, %v1917_v50 }
 0xf9f   :  { %4387 = vmatprep.mubr.msk.f32.mxu0 %vm4823_vm3, %v4822_v15 }
0x1071   :  { %v4363_v53 = vpop.f32.mrb[12].mxu0 }
0x1072   :  { %v2001_v54 = vadd.f32 %v4363_v53, %v1921_v52  ;;  %v1995_v20 = vpop.f32.mrb[13].mxu0 }
0x1073   :  { %v1996_v55 = vadd.f32 %v1995_v20, %v1921_v52 }
0x1074   :  { %v2005_v48 = vadd.f32 %v2001_v54, %v1814_v8  ;;  %v2052_v8 = vld [vmem:[#allocation5 + $0xc0] sm:$0xff] }
0x1075   :  { %v2004_v21 = vadd.f32 %v1996_v55, %v1813_v7  ;;  %v4583_v7 = vpack.c.bf16 %v2052_v8, %v2051_v9 }
0x1076   :  { %v2009_v45 = vsel %vm155_vm2, %v2005_v48, 0.0  ;;  %v2015_v59 = vmul.f32 %v2005_v48, %v2005_v48 }
0x1077   :  { %2010 = vadd.xlane.f32.xlu1 %v2009_v45  ;;  %v2006_v61 = vsel %vm155_vm2, %v2004_v21, 0.0  ;;  %v2014_v62 = vmul.f32 %v2004_v21, %v2004_v21  ;;  %4584 = vmatprep.subr.bf16.mxu1 %v4583_v7 }
0x1078   :  { %2007 = vadd.xlane.f32.xlu0 %v2006_v61  ;;  %v2019_v1 = vsel %vm155_vm2, %v2015_v59, 0.0  ;;  %4586 = vmatpush3.bf16.msra.mxu1 %v4583_v7 }
0x1079   :  { %v2016_v3 = vsel %vm155_vm2, %v2014_v62, 0.0  ;;  %4375 = vmatprep.subr.mxu1 %v4822_v15 }
0x107b   :  { %2020 = vadd.xlane.f32.xlu1 %v2019_v1 }
0x107c   :  { %2017 = vadd.xlane.f32.xlu0 %v2016_v3 }
0x1104   :  { %v2011_v10 = vpop.xlane.xlu1 %2010 }
0x1105   :  { %v2013_v11 = vmul.f32 0.03125, %v2011_v10  ;;  %v2008_v12 = vpop.xlane.xlu0 %2007 }
0x1106   :  { %v2012_v17 = vmul.f32 0.03125, %v2008_v12 }
0x1107   :  { %v2025_v19 = vmul.f32 %v2013_v11, %v2013_v11  ;;  %v2029_v33 = vsub.f32 %v2005_v48, %v2013_v11 }
0x1108   :  { %v2021_v18 = vpop.xlane.xlu1 %2020  ;;  %v2024_v24 = vmul.f32 %v2012_v17, %v2012_v17  ;;  %v2028_v36 = vsub.f32 %v2004_v21, %v2012_v17 }
0x1109   :  { %v2023_v22 = vmul.f32 0.03125, %v2021_v18  ;;  %v2018_v23 = vpop.xlane.xlu0 %2017 }
0x110a   :  { %v2022_v58 = vmul.f32 0.03125, %v2018_v23 }
0x110b   :  { %v2027_v26 = vsub.f32 %v2023_v22, %v2025_v19 }
0x110c   :  { %v2026_v28 = vsub.f32 %v2022_v58, %v2024_v24 }
0x110d   :  { %v2031_v29 = vadd.f32 1e-12, %v2027_v26 }
0x110e   :  { %v2030_v31 = vadd.f32 1e-12, %v2026_v28 }
0x110f   :  { %4693 = vrsqrt.f32 %v2031_v29 }
0x1110   :  { %4695 = vrsqrt.f32 %v2030_v31 }
0x1119   :  { %v4694_v35 = vpop.eup %4693 }
0x111a   :  { %v4696_v37 = vpop.eup %4695  ;;  %v2035_v38 = vmul.f32 %v4694_v35, %v2029_v33 }
0x111b   :  { %v2034_v39 = vmul.f32 %v4696_v37, %v2028_v36  ;;  %v5226_v37 = vld [vmem:[%s5389_s1] ss:$0 sm:$0xff] }
0x111c   :  { %v2041_v13 = vmul.f32 %v2039_v34, %v2035_v38 }
0x111d   :  { %v2040_v14 = vmul.f32 %v2039_v34, %v2034_v39 }
0x111e   :  { %v5151_v42 = vadd.f32 %v2045_v40, %v2041_v13 }
0x111f   :  { %v5149_v41 = vadd.f32 %v2045_v40, %v2040_v14 }
0x1121   :  { %4372 = vmatprep.mubr.msk.f32.mxu1 %vm155_vm2, %v5149_v41 }
0x1122   :  { %4373 = vmatmul.mubr.msk.f32.vlgmr.msra.gmra.mrb[28].mxu1 %vm155_vm2, %v5151_v42 }
0x1123   :  { %4377 = vmatprep.mubr.msk.f32.mxu1 %vm4823_vm3, %v4822_v15 }
0x11f5   :  { %v4374_v44 = vpop.f32.mrb[28].mxu1 }
0x11f6   :  { %v5163_v46 = vadd.f32 %v4374_v44, %v2073_v16  ;;  %v2146_v47 = vpop.f32.mrb[29].mxu1 }
0x11f7   :  { %v5165_v49 = vadd.f32 %v2146_v47, %v2073_v16  ;;  %v5233_v16 = vld [vmem:[%s5389_s1 + $0x1] ss:$0 sm:$0xff]  ;;  %s4838_s1 = smov [#allocation7]  }
0x11f8   :  { %2233 = vrot.lane.b32.xlu1 %v5163_v46, %s4824_s0 }
0x11f9   :  { %2156 = vrot.lane.b32.xlu0 %v5165_v49, %s4824_s0 }
0x126a   :  { %v2234_v52 = vpop.permute.xlu1 %2233 }
0x126b   :  { %v2157_v50 = vpop.permute.xlu0 %2156 }
0x126c   :  { %4376 = vmatpush3.xpose.msk.msra.mxu1 %vm310_vm4, %v2157_v50 }
0x126d   :  { %4380 = vmatprep.subr.mxu1 %v4822_v15 }
0x126f   :  { %4378 = vmatmul.mubr.msk.f32.vlgmr.msra.gmra.mrb[30].mxu1 %vm310_vm4, %v5165_v49 }
0x1270   :  { %4381 = vmatpush3.xpose.msk.msra.mxu1 %vm310_vm4, %v2234_v52  ;;  %4382 = vmatprep.mubr.msk.f32.mxu1 %vm4823_vm3, %v4822_v15 }
0x1271   :  { %4390 = vmatprep.subr.mxu1 %v4822_v15 }
0x1273   :  { %4383 = vmatmul.mubr.msk.f32.vlgmr.msra.gmra.mrb[32].mxu1 %vm310_vm4, %v5163_v46 }
0x1274   :  { %4392 = vmatprep.mubr.msk.f32.mxu1 %vm4823_vm3, %v4822_v15 }
0x1342   :  { %v2228_v0 = vpop.f32.mrb[30].mxu1 }
0x1343   :  { %v2309_v53 = vmul.f32 0.35355338, %v2228_v0  ;;  %v4379_v54 = vpop.f32.mrb[31].mxu1 }
0x1345   :  { %v2311_v20 = vadd.f32 %v4951_v25, %v2309_v53 }
0x1346   :  { %v2305_v55 = vpop.f32.mrb[32].mxu1 }
0x1347   :  { %v2310_v48 = vmul.f32 0.35355338, %v2305_v55  ;;  %v4384_v21 = vpop.f32.mrb[33].mxu1  ;;  %v2313_v45 = vsel %vm310_vm4, %v2311_v20, -inf }
0x1348   :  { %2314 = vmax.xlane.f32.xlu1 %v2313_v45 }
0x1349   :  { %v2312_v59 = vadd.f32 %v4957_v30, %v2310_v48 }
0x134b   :  { %v2316_v61 = vsel %vm310_vm4, %v2312_v59, -inf }
0x134c   :  { %2317 = vmax.xlane.f32.xlu0 %v2316_v61 }
0x1359   :  { %2411 = vrot.lane.b32.xlu1 %v5163_v46, %s4825_s21 }
0x135d   :  { %2489 = vrot.lane.b32.xlu1 %v5165_v49, %s4826_s22 }
0x1362   :  { %2335 = vrot.lane.b32.xlu0 %v5165_v49, %s4825_s21 }
0x13d5   :  { %v2315_v25 = vpop.xlane.xlu1 %2314 }
0x13d6   :  { %v2319_v62 = vsub.f32 %v2311_v20, %v2315_v25 }
0x13d8   :  { %v2321_v1 = vmul.f32 1.442695, %v2319_v62 }
0x13d9   :  { %v2412_v3 = vpop.permute.xlu1 %2411  ;;  %v2318_v4 = vpop.xlane.xlu0 %2317 }
0x13da   :  { %4697 = vpow2.f32 %v2321_v1  ;;  %v2320_v5 = vsub.f32 %v2312_v59, %v2318_v4  ;;  %4391 = vmatpush3.msra.mxu1 %v2412_v3 }
0x13db   :  { %4400 = vmatprep.subr.mxu1 %v4822_v15 }
0x13dc   :  { %v2323_v30 = vmul.f32 1.442695, %v2320_v5 }
0x13dd   :  { %v2336_v6 = vpop.permute.xlu0 %2335  ;;  %v2490_v11 = vpop.permute.xlu1 %2489 }
0x13de   :  { %4699 = vpow2.f32 %v2323_v30  ;;  %4386 = vmatpush3.msra.mxu0 %v2336_v6 }
0x13df   :  { %4395 = vmatprep.subr.mxu0 %v4822_v15 }
0x13e4   :  { %v4698_v9 = vpop.eup %4697 }
0x13e5   :  { %v2325_v8 = vsel %vm310_vm4, %v4698_v9, 0.0 }
0x13e6   :  { %2326 = vadd.xlane.f32.xlu0 %v2325_v8 }
0x13e8   :  { %v4700_v7 = vpop.eup %4699 }
0x13e9   :  { %v2328_v10 = vsel %vm310_vm4, %v4700_v7, 0.0 }
0x13ea   :  { %2329 = vadd.xlane.f32.xlu1 %v2328_v10 }
0x13fb   :  { %2487 = vrot.lane.b32.xlu1 %v5165_v49, %s4827_s23 }
0x13fc   :  { %2567 = vrot.lane.b32.xlu0 %v5163_v46, %s4826_s22 }
0x1400   :  { %2565 = vrot.lane.b32.xlu0 %v5163_v46, %s4827_s23 }
0x1473   :  { %v2327_v12 = vpop.xlane.xlu0 %2326 }
0x1474   :  { %4701 = vrcp.f32 %v2327_v12 }
0x1477   :  { %v2330_v17 = vpop.xlane.xlu1 %2329  ;;  %v2568_v23 = vpop.permute.xlu0 %2567 }
0x1478   :  { %4703 = vrcp.f32 %v2330_v17 }
0x147b   :  { %v2488_v58 = vpop.permute.xlu1 %2487  ;;  %v2566_v26 = vpop.permute.xlu0 %2565 }
0x147e   :  { %v4702_v18 = vpop.eup %4701 }
0x147f   :  { %v2332_v19 = vmul.f32 %v4702_v18, %v4698_v9 }
0x1481   :  { %4388 = vmatmul.mubr.msk.f32.vlgmr.msra.gmra.mrb[14].mxu0 %vm310_vm4, %v2332_v19 }
0x1482   :  { %v4704_v22 = vpop.eup %4703  ;;  %4396 = vmatpush3.xpose.msk.msra.mxu0 %vm310_vm4, %v2490_v11  ;;  %4397 = vmatprep.mubr.msk.f32.mxu0 %vm4823_vm3, %v4822_v15 }
0x1483   :  { %v2334_v24 = vmul.f32 %v4704_v22, %v4700_v7  ;;  %4405 = vmatprep.subr.mxu0 %v4822_v15 }
0x1485   :  { %4393 = vmatmul.mubr.msk.f32.vlgmr.msra.gmra.mrb[34].mxu1 %vm310_vm4, %v2334_v24  ;;  %4398 = vmatmul.mubr.msk.f32.vlgmr.msra.gmra.mrb[16].mxu0 %vm310_vm4, %v2488_v58 }
0x1486   :  { %4401 = vmatpush3.xpose.msk.msra.mxu1 %vm310_vm4, %v2568_v23  ;;  %4402 = vmatprep.mubr.msk.f32.mxu1 %vm4823_vm3, %v4822_v15 }
0x1487   :  { %4410 = vmatprep.subr.mxu1 %v4822_v15  ;;  %4407 = vmatprep.mubr.msk.f32.mxu0 %vm4823_vm3, %v4822_v15 }
0x1489   :  { %4403 = vmatmul.mubr.msk.f32.vlgmr.msra.gmra.mrb[36].mxu1 %vm310_vm4, %v2566_v26 }
0x148a   :  { %4412 = vmatprep.mubr.msk.f32.mxu1 %vm4823_vm3, %v4822_v15 }
0x1554   :  { %v5219_v28 = vpop.f32.mrb[14].mxu0 }
0x1555   :  { %v4389_v29 = vpop.f32.mrb[15].mxu0 }
0x1558   :  { %v5221_v31 = vpop.f32.mrb[34].mxu1  ;;  %v2561_v33 = vpop.f32.mrb[16].mxu0 }
0x1559   :  { %v2643_v34 = vmul.f32 0.35355338, %v2561_v33  ;;  %v4394_v35 = vpop.f32.mrb[35].mxu1  ;;  %v4399_v36 = vpop.f32.mrb[17].mxu0 }
0x155b   :  { %v2645_v38 = vadd.f32 %v5226_v37, %v2643_v34 }
0x155c   :  { %v2639_v39 = vpop.f32.mrb[36].mxu1 }
0x155d   :  { %v2644_v40 = vmul.f32 0.35355338, %v2639_v39  ;;  %v4404_v13 = vpop.f32.mrb[37].mxu1  ;;  %v2647_v14 = vsel %vm310_vm4, %v2645_v38, -inf }
0x155e   :  { %2648 = vmax.xlane.f32.xlu1 %v2647_v14 }
0x155f   :  { %v2646_v44 = vadd.f32 %v5233_v16, %v2644_v40 }
0x1561   :  { %v2650_v47 = vsel %vm310_vm4, %v2646_v44, -inf }
0x1562   :  { %2651 = vmax.xlane.f32.xlu0 %v2650_v47 }
0x156f   :  { %2745 = vrot.lane.b32.xlu1 %v5163_v46, %s4828_s24 }
0x1573   :  { %2823 = vrot.lane.b32.xlu1 %v5165_v49, %s4829_s25 }
0x1578   :  { %2669 = vrot.lane.b32.xlu0 %v5165_v49, %s4828_s24 }
0x15eb   :  { %v2649_v50 = vpop.xlane.xlu1 %2648 }
0x15ec   :  { %v2653_v52 = vsub.f32 %v2645_v38, %v2649_v50 }
0x15ee   :  { %v2655_v0 = vmul.f32 1.442695, %v2653_v52 }
0x15ef   :  { %v2746_v53 = vpop.permute.xlu1 %2745  ;;  %v2652_v54 = vpop.xlane.xlu0 %2651 }
0x15f0   :  { %4705 = vpow2.f32 %v2655_v0  ;;  %v2654_v20 = vsub.f32 %v2646_v44, %v2652_v54  ;;  %4411 = vmatpush3.msra.mxu1 %v2746_v53 }
0x15f1   :  { %4420 = vmatprep.subr.mxu1 %v4822_v15 }
0x15f2   :  { %v2657_v55 = vmul.f32 1.442695, %v2654_v20 }
0x15f3   :  { %v2670_v48 = vpop.permute.xlu0 %2669  ;;  %v2824_v25 = vpop.permute.xlu1 %2823 }
0x15f4   :  { %4707 = vpow2.f32 %v2657_v55  ;;  %4406 = vmatpush3.msra.mxu0 %v2670_v48 }
0x15f5   :  { %4415 = vmatprep.subr.mxu0 %v4822_v15 }
0x15fa   :  { %v4706_v21 = vpop.eup %4705 }
0x15fb   :  { %v2659_v45 = vsel %vm310_vm4, %v4706_v21, 0.0 }
0x15fc   :  { %2660 = vadd.xlane.f32.xlu0 %v2659_v45 }
0x15fe   :  { %v4708_v59 = vpop.eup %4707 }
0x15ff   :  { %v2662_v61 = vsel %vm310_vm4, %v4708_v59, 0.0 }
0x1600   :  { %2663 = vadd.xlane.f32.xlu1 %v2662_v61 }
0x1611   :  { %2821 = vrot.lane.b32.xlu1 %v5165_v49, %s4830_s27 }
0x1612   :  { %2901 = vrot.lane.b32.xlu0 %v5163_v46, %s4829_s25 }
0x1616   :  { %2899 = vrot.lane.b32.xlu0 %v5163_v46, %s4830_s27 }
0x1689   :  { %v2661_v62 = vpop.xlane.xlu0 %2660 }
0x168a   :  { %4709 = vrcp.f32 %v2661_v62 }
0x168d   :  { %v2664_v1 = vpop.xlane.xlu1 %2663  ;;  %v2902_v30 = vpop.permute.xlu0 %2901 }
0x168e   :  { %4711 = vrcp.f32 %v2664_v1 }
0x1691   :  { %v2822_v9 = vpop.permute.xlu1 %2821  ;;  %v2900_v8 = vpop.permute.xlu0 %2899 }
0x1694   :  { %v4710_v3 = vpop.eup %4709 }
0x1695   :  { %v2666_v4 = vmul.f32 %v4710_v3, %v4706_v21 }
0x1697   :  { %4408 = vmatmul.mubr.msk.f32.vlgmr.msra.gmra.mrb[18].mxu0 %vm310_vm4, %v2666_v4 }
0x1698   :  { %v4712_v5 = vpop.eup %4711  ;;  %4416 = vmatpush3.xpose.msk.msra.mxu0 %vm310_vm4, %v2824_v25  ;;  %4417 = vmatprep.mubr.msk.f32.mxu0 %vm4823_vm3, %v4822_v15 }
0x1699   :  { %v2668_v6 = vmul.f32 %v4712_v5, %v4708_v59  ;;  %4425 = vmatprep.subr.mxu0 %v4822_v15 }
0x169b   :  { %4413 = vmatmul.mubr.msk.f32.vlgmr.msra.gmra.mrb[38].mxu1 %vm310_vm4, %v2668_v6  ;;  %4418 = vmatmul.mubr.msk.f32.vlgmr.msra.gmra.mrb[20].mxu0 %vm310_vm4, %v2822_v9 }
0x169c   :  { %4421 = vmatpush3.xpose.msk.msra.mxu1 %vm310_vm4, %v2902_v30  ;;  %4422 = vmatprep.mubr.msk.f32.mxu1 %vm4823_vm3, %v4822_v15 }
0x169d   :  { %4430 = vmatprep.subr.mxu1 %v4822_v15  ;;  %4427 = vmatprep.mubr.msk.f32.mxu0 %vm4823_vm3, %v4822_v15 }
0x169f   :  { %4423 = vmatmul.mubr.msk.f32.vlgmr.msra.gmra.mrb[40].mxu1 %vm310_vm4, %v2900_v8 }
0x16a0   :  { %4432 = vmatprep.mubr.msk.f32.mxu1 %vm4823_vm3, %v4822_v15 }
0x176a   :  { %v5269_v7 = vpop.f32.mrb[18].mxu0 }
0x176b   :  { %v4409_v10 = vpop.f32.mrb[19].mxu0 }
0x176e   :  { %v5271_v11 = vpop.f32.mrb[38].mxu1  ;;  %v2895_v12 = vpop.f32.mrb[20].mxu0 }
0x176f   :  { %v2977_v17 = vmul.f32 0.35355338, %v2895_v12  ;;  %v4414_v18 = vpop.f32.mrb[39].mxu1  ;;  %v4419_v19 = vpop.f32.mrb[21].mxu0 }
0x1771   :  { %v2979_v22 = vadd.f32 %v5226_v37, %v2977_v17 }
0x1772   :  { %v2973_v23 = vpop.f32.mrb[40].mxu1 }
0x1773   :  { %v2978_v24 = vmul.f32 0.35355338, %v2973_v23  ;;  %v4424_v58 = vpop.f32.mrb[41].mxu1  ;;  %v2981_v26 = vsel %vm310_vm4, %v2979_v22, -inf }
0x1774   :  { %2982 = vmax.xlane.f32.xlu1 %v2981_v26 }
0x1775   :  { %v2980_v29 = vadd.f32 %v5233_v16, %v2978_v24 }
0x1777   :  { %v2984_v33 = vsel %vm310_vm4, %v2980_v29, -inf }
0x1778   :  { %2985 = vmax.xlane.f32.xlu0 %v2984_v33 }
0x1785   :  { %3079 = vrot.lane.b32.xlu1 %v5163_v46, %s4831_s28 }
0x1789   :  { %3157 = vrot.lane.b32.xlu1 %v5165_v49, %s4832_s29 }
0x178e   :  { %3003 = vrot.lane.b32.xlu0 %v5165_v49, %s4831_s28 }
0x1801   :  { %v2983_v34 = vpop.xlane.xlu1 %2982 }
0x1802   :  { %v2987_v35 = vsub.f32 %v2979_v22, %v2983_v34 }
0x1804   :  { %v2989_v36 = vmul.f32 1.442695, %v2987_v35 }
0x1805   :  { %v3080_v38 = vpop.permute.xlu1 %3079  ;;  %v2986_v39 = vpop.xlane.xlu0 %2985 }
0x1806   :  { %4713 = vpow2.f32 %v2989_v36  ;;  %v2988_v40 = vsub.f32 %v2980_v29, %v2986_v39  ;;  %4431 = vmatpush3.msra.mxu1 %v3080_v38 }
0x1807   :  { %4440 = vmatprep.subr.mxu1 %v4822_v15 }
0x1808   :  { %v2991_v13 = vmul.f32 1.442695, %v2988_v40  ;;  %v2054_v40 = vld [vmem:[#allocation5 + $0xd0] sm:$0xff] }
0x1809   :  { %v3004_v14 = vpop.permute.xlu0 %3003  ;;  %v3158_v0 = vpop.permute.xlu1 %3157 }
0x180a   :  { %4715 = vpow2.f32 %v2991_v13  ;;  %4426 = vmatpush3.msra.mxu0 %v3004_v14  ;;  %v2055_v14 = vld [vmem:[#allocation5 + $0xd8] sm:$0xff] }
0x180b   :  { %4435 = vmatprep.subr.mxu0 %v4822_v15 }
0x1810   :  { %v4714_v44 = vpop.eup %4713 }
0x1811   :  { %v2993_v47 = vsel %vm310_vm4, %v4714_v44, 0.0 }
0x1812   :  { %2994 = vadd.xlane.f32.xlu0 %v2993_v47 }
0x1814   :  { %v4716_v50 = vpop.eup %4715 }
0x1815   :  { %v2996_v52 = vsel %vm310_vm4, %v4716_v50, 0.0 }
0x1816   :  { %2997 = vadd.xlane.f32.xlu1 %v2996_v52 }
0x1827   :  { %3155 = vrot.lane.b32.xlu1 %v5165_v49, %s4833_s30 }
0x1828   :  { %3235 = vrot.lane.b32.xlu0 %v5163_v46, %s4832_s29 }
0x182c   :  { %3233 = vrot.lane.b32.xlu0 %v5163_v46, %s4833_s30 }
0x189f   :  { %v2995_v53 = vpop.xlane.xlu0 %2994 }
0x18a0   :  { %4717 = vrcp.f32 %v2995_v53 }
0x18a3   :  { %v2998_v54 = vpop.xlane.xlu1 %2997  ;;  %v3236_v21 = vpop.permute.xlu0 %3235 }
0x18a4   :  { %4719 = vrcp.f32 %v2998_v54 }
0x18a7   :  { %v3156_v59 = vpop.permute.xlu1 %3155  ;;  %v3234_v61 = vpop.permute.xlu0 %3233 }
0x18aa   :  { %v4718_v20 = vpop.eup %4717 }
0x18ab   :  { %v3000_v55 = vmul.f32 %v4718_v20, %v4714_v44  ;;  %v2056_v44 = vld [vmem:[#allocation5 + $0xe0] sm:$0xff] }
0x18ac   :  { %v4591_v47 = vpack.c.bf16 %v2056_v44, %v2055_v14 }
0x18ad   :  { %4428 = vmatmul.mubr.msk.f32.vlgmr.msra.gmra.mrb[22].mxu0 %vm310_vm4, %v3000_v55 }
0x18ae   :  { %v4720_v48 = vpop.eup %4719  ;;  %4436 = vmatpush3.xpose.msk.msra.mxu0 %vm310_vm4, %v3158_v0  ;;  %4437 = vmatprep.mubr.msk.f32.mxu0 %vm4823_vm3, %v4822_v15 }
0x18af   :  { %v3002_v45 = vmul.f32 %v4720_v48, %v4716_v50  ;;  %4445 = vmatprep.subr.mxu0 %v4822_v15 }
0x18b1   :  { %4433 = vmatmul.mubr.msk.f32.vlgmr.msra.gmra.mrb[42].mxu1 %vm310_vm4, %v3002_v45  ;;  %4438 = vmatmul.mubr.msk.f32.vlgmr.msra.gmra.mrb[24].mxu0 %vm310_vm4, %v3156_v59 }
0x18b2   :  { %4441 = vmatpush3.xpose.msk.msra.mxu1 %vm310_vm4, %v3236_v21  ;;  %4442 = vmatprep.mubr.msk.f32.mxu1 %vm4823_vm3, %v4822_v15 }
0x18b3   :  { %4450 = vmatprep.subr.mxu1 %v4822_v15  ;;  %4447 = vmatprep.mubr.msk.f32.mxu0 %vm4823_vm3, %v4822_v15 }
0x18b5   :  { %4443 = vmatmul.mubr.msk.f32.vlgmr.msra.gmra.mrb[44].mxu1 %vm310_vm4, %v3234_v61 }
0x18b6   :  { %4452 = vmatprep.mubr.msk.f32.mxu1 %vm4823_vm3, %v4822_v15 }
0x1980   :  { %v3075_v25 = vpop.f32.mrb[22].mxu0 }
0x1981   :  { %v4429_v62 = vpop.f32.mrb[23].mxu0 }
0x1984   :  { %v3151_v1 = vpop.f32.mrb[42].mxu1  ;;  %v3229_v3 = vpop.f32.mrb[24].mxu0 }
0x1985   :  { %v3311_v4 = vmul.f32 0.35355338, %v3229_v3  ;;  %v4434_v5 = vpop.f32.mrb[43].mxu1  ;;  %v4439_v30 = vpop.f32.mrb[25].mxu0 }
0x1987   :  { %v3313_v6 = vadd.f32 %v5226_v37, %v3311_v4 }
0x1988   :  { %v3307_v9 = vpop.f32.mrb[44].mxu1 }
0x1989   :  { %v3312_v8 = vmul.f32 0.35355338, %v3307_v9  ;;  %v4444_v10 = vpop.f32.mrb[45].mxu1  ;;  %v3315_v12 = vsel %vm310_vm4, %v3313_v6, -inf }
0x198a   :  { %3316 = vmax.xlane.f32.xlu1 %v3315_v12 }
0x198b   :  { %v3314_v17 = vadd.f32 %v5233_v16, %v3312_v8 }
0x198d   :  { %v3318_v18 = vsel %vm310_vm4, %v3314_v17, -inf }
0x198e   :  { %3319 = vmax.xlane.f32.xlu0 %v3318_v18 }
0x1a17   :  { %v3317_v19 = vpop.xlane.xlu1 %3316 }
0x1a18   :  { %v3321_v22 = vsub.f32 %v3313_v6, %v3317_v19  ;;  %v2057_v19 = vld [vmem:[#allocation5 + $0xe8] sm:$0xff] }
0x1a1a   :  { %v3323_v23 = vmul.f32 1.442695, %v3321_v22  ;;  %v2058_v22 = vld [vmem:[#allocation5 + $0xf0] sm:$0xff] }
0x1a1b   :  { %v3320_v24 = vpop.xlane.xlu0 %3319 }
0x1a1c   :  { %4721 = vpow2.f32 %v3323_v23  ;;  %v3322_v58 = vsub.f32 %v3314_v17, %v3320_v24  ;;  %v4595_v23 = vpack.c.bf16 %v2058_v22, %v2057_v19 }
0x1a1e   :  { %v3325_v26 = vmul.f32 1.442695, %v3322_v58 }
0x1a20   :  { %4723 = vpow2.f32 %v3325_v26 }
0x1a26   :  { %v4722_v37 = vpop.eup %4721 }
0x1a27   :  { %v3327_v29 = vsel %vm310_vm4, %v4722_v37, 0.0 }
0x1a28   :  { %3328 = vadd.xlane.f32.xlu0 %v3327_v29 }
0x1a2a   :  { %v4724_v33 = vpop.eup %4723 }
0x1a2b   :  { %v3330_v34 = vsel %vm310_vm4, %v4724_v33, 0.0 }
0x1a2c   :  { %3331 = vadd.xlane.f32.xlu1 %v3330_v34 }
0x1a3d   :  { %3413 = vrot.lane.b32.xlu1 %v5163_v46, %s4834_s5 }
0x1a3e   :  { %3337 = vrot.lane.b32.xlu0 %v5165_v49, %s4834_s5 }
0x1a41   :  { %3491 = vrot.lane.b32.xlu1 %v5269_v7, %s4818_s26 }
0x1a42   :  { %3493 = vrot.lane.b32.xlu0 %v5271_v11, %s4818_s26  ;;  %v2053_v11 = vld [vmem:[#allocation5 + $0xc8] sm:$0xff]  ;;  %s3973_s26 = sshll.u32 %s4838_s1, 4  ;;  %s3974_s26 = int_to_ptr.vmem [resolvable:$true] %s3973_s26 }
0x1a43   :  { %v4587_v13 = vpack.c.bf16 %v2054_v40, %v2053_v11  ;;  %v3639_v40 = vrot.slane %v5159_v43, %v5113_v56  ;;  %s4788_s12 = scalar_lea.vmem %s3974_s26, 32  ;;  %p4793_p3 = scmp.lt.s32.totalorder %s3974_s26, %s3974_s26 }
0x1a44   :  { %p4789_p2 = scmp.ne.s32.totalorder %s3974_s26, %s4788_s12  ;;  %p4794_p4 = scmp.lt.s32.totalorder %s4788_s12, %s4788_s12 }
0x1a45   :  { %3499 = vrot.lane.b32.xlu1 %v3075_v25, %s4835_s6 }
0x1a46   :  { %3501 = vrot.lane.b32.xlu0 %v3151_v1, %s4835_s6  ;;  %p4795_p5 = por %p4794_p4, %p4793_p3 }
0x1a48   :  { %p4796_p6 = pnand %p4795_p5, %p4789_p2 }
0x1ab5   :  { %v3329_v16 = vpop.xlane.xlu0 %3328 }
0x1ab6   :  { %4725 = vrcp.f32 %v3329_v16 }
0x1ab9   :  { %v3332_v35 = vpop.xlane.xlu1 %3331  ;;  %v3338_v36 = vpop.permute.xlu0 %3337 }
0x1aba   :  { %4727 = vrcp.f32 %v3332_v35  ;;  %4446 = vmatpush3.msra.mxu0 %v3338_v36 }
0x1abb   :  { %4588 = vmatprep.subr.bf16.mxu0 %v4587_v13 }
0x1abd   :  { %v3414_v46 = vpop.permute.xlu1 %3413  ;;  %v3494_v20 = vpop.permute.xlu0 %3493 }
0x1abe   :  { %4451 = vmatpush3.msra.mxu1 %v3414_v46  ;;  %v3514_v25 = vsel %vm310_vm4, %v5221_v31, %v3494_v20 }
0x1abf   :  { %4596 = vmatprep.subr.bf16.mxu1 %v4595_v23 }
0x1ac0   :  { %v4726_v38 = vpop.eup %4725 }
0x1ac1   :  { %v3334_v49 = vmul.f32 %v4726_v38, %v4722_v37  ;;  %v3492_v54 = vpop.permute.xlu1 %3491  ;;  %v3502_v21 = vpop.permute.xlu0 %3501 }
0x1ac2   :  { %v3513_v48 = vsel %vm310_vm4, %v5219_v28, %v3492_v54  ;;  %v3516_v62 = vsel %vm1680_vm6, %v3514_v25, %v3502_v21  ;;  %v3522_v28 = vrot.slane %v5159_v43, %v4906_v2  ;;  %v2066_v25 = vld [vmem:[#allocation5 + $0x130] sm:$0xff] }
0x1ac3   :  { %4448 = vmatmul.mubr.msk.f32.vlgmr.msra.gmra.mrb[26].mxu0 %vm310_vm4, %v3334_v49 }
0x1ac4   :  { %v4728_v7 = vpop.eup %4727  ;;  %4590 = vmatpush3.bf16.msra.mxu0 %v4587_v13 }
0x1ac5   :  { %v3336_v39 = vmul.f32 %v4728_v7, %v4724_v33  ;;  %4592 = vmatprep.subr.bf16.mxu0 %v4591_v47  ;;  %v3500_v55 = vpop.permute.xlu1 %3499 }
0x1ac6   :  { %v3515_v45 = vsel %vm1680_vm6, %v3513_v48, %v3500_v55  ;;  %v2061_v55 = vld [vmem:[#allocation5 + $0x108] sm:$0xff]  ;;  %v2062_v48 = vld [vmem:[#allocation5 + $0x110] sm:$0xff] }
0x1ac7   :  { %4453 = vmatmul.mubr.msk.f32.vlgmr.msra.gmra.mrb[46].mxu1 %vm310_vm4, %v3336_v39  ;;  %v4603_v21 = vpack.c.bf16 %v2062_v48, %v2061_v55 }
0x1ac8   :  { %4594 = vmatpush3.bf16.msra.mxu0 %v4591_v47  ;;  %4598 = vmatpush3.bf16.msra.mxu1 %v4595_v23 }
0x1ac9   :  { %4604 = vmatprep.subr.bf16.mxu0 %v4603_v21 }
0x1b96   :  { %v3409_v50 = vpop.f32.mrb[26].mxu0 }
0x1b97   :  { %3507 = vrot.lane.b32.xlu1 %v3409_v50, %s4836_s7  ;;  %v4449_v52 = vpop.f32.mrb[27].mxu0  ;;  %v3645_v50 = vrot.slane %v5159_v43, %v1811_v57 }
0x1b9a   :  { %v3485_v0 = vpop.f32.mrb[46].mxu1 }
0x1b9b   :  { %3509 = vrot.lane.b32.xlu0 %v3485_v0, %s4836_s7  ;;  %v4454_v53 = vpop.f32.mrb[47].mxu1 }
0x1c09   :  { %v3508_v59 = vpop.permute.xlu1 %3507 }
0x1c0a   :  { %v3517_v61 = vsel %vm1683_vm5, %v3515_v45, %v3508_v59  ;;  %v2063_v45 = vld [vmem:[#allocation5 + $0x118] sm:$0xff]  ;;  %v2064_v59 = vld [vmem:[#allocation5 + $0x120] sm:$0xff] }
0x1c0b   :  { %4463 = vmatprep.mubr.msk.f32.mxu0 %vm155_vm2, %v3517_v61  ;;  %v4607_v57 = vpack.c.bf16 %v2064_v59, %v2063_v45  ;;  %v2065_v61 = vld [vmem:[#allocation5 + $0x128] sm:$0xff] }
0x1c0d   :  { %v3510_v1 = vpop.permute.xlu0 %3509 }
0x1c0e   :  { %v3518_v3 = vsel %vm1683_vm5, %v3516_v62, %v3510_v1  ;;  %v4611_v62 = vpack.c.bf16 %v2066_v25, %v2065_v61  ;;  %v2067_v1 = vld [vmem:[#allocation5 + $0x138] sm:$0xff] }
0x1c0f   :  { %4464 = vmatmul.mubr.msk.f32.vlgmr.msra.gmra.mrb[28].mxu0 %vm155_vm2, %v3518_v3  ;;  %v2068_v3 = vld [vmem:[#allocation5 + $0x140] sm:$0xff] }
0x1c10   :  { %4606 = vmatpush3.bf16.msra.mxu0 %v4603_v21 }
0x1c11   :  { %4608 = vmatprep.subr.bf16.mxu0 %v4607_v57 }
0x1c14   :  { %4610 = vmatpush3.bf16.msra.mxu0 %v4607_v57 }
0x1c15   :  { %4612 = vmatprep.subr.bf16.mxu0 %v4611_v62 }
0x1c18   :  { %4614 = vmatpush3.bf16.msra.mxu0 %v4611_v62 }
0x1ce2   :  { %v4465_v4 = vpop.f32.mrb[28].mxu0 }
0x1ce3   :  { %v3601_v5 = vadd.f32 %v4465_v4, %v3522_v28  ;;  %v3595_v30 = vpop.f32.mrb[29].mxu0 }
0x1ce4   :  { %v3596_v6 = vadd.f32 %v3595_v30, %v3522_v28  ;;  %v4615_v28 = vpack.c.bf16 %v2068_v3, %v2067_v1 }
0x1ce5   :  { %v3605_v9 = vadd.f32 %v3601_v5, %v5151_v42  ;;  %v2060_v42 = vld [vmem:[#allocation5 + $0x100] sm:$0xff] }
0x1ce6   :  { %v3604_v8 = vadd.f32 %v3596_v6, %v5149_v41  ;;  %v2059_v41 = vld [vmem:[#allocation5 + $0xf8] sm:$0xff]  ;;  %4616 = vmatprep.subr.bf16.mxu0 %v4615_v28 }
0x1ce7   :  { %v3609_v31 = vsel %vm155_vm2, %v3605_v9, 0.0  ;;  %v3615_v17 = vmul.f32 %v3605_v9, %v3605_v9  ;;  %v4599_v24 = vpack.c.bf16 %v2060_v42, %v2059_v41  ;;  %4618 = vmatpush3.bf16.msra.mxu0 %v4615_v28  ;;  %v3871_v28 = vrot.slane %v5159_v43, %v2038_v32 }
0x1ce8   :  { %3610 = vadd.xlane.f32.xlu0 %v3609_v31  ;;  %v3606_v10 = vsel %vm155_vm2, %v3604_v8, 0.0  ;;  %v3614_v12 = vmul.f32 %v3604_v8, %v3604_v8 }
0x1ce9   :  { %3607 = vadd.xlane.f32.xlu1 %v3606_v10  ;;  %v3619_v2 = vsel %vm155_vm2, %v3615_v17, 0.0  ;;  %4600 = vmatprep.subr.bf16.mxu1 %v4599_v24 }
0x1cea   :  { %v3616_v18 = vsel %vm155_vm2, %v3614_v12, 0.0  ;;  %4602 = vmatpush3.bf16.msra.mxu1 %v4599_v24 }
0x1cec   :  { %3617 = vadd.xlane.f32.xlu0 %v3616_v18 }
0x1ced   :  { %3620 = vadd.xlane.f32.xlu1 %v3619_v2 }
0x1d75   :  { %v3611_v58 = vpop.xlane.xlu0 %3610 }
0x1d76   :  { %v3608_v26 = vpop.xlane.xlu1 %3607  ;;  %v3613_v37 = vmul.f32 0.03125, %v3611_v58 }
0x1d77   :  { %v3612_v29 = vmul.f32 0.03125, %v3608_v26 }
0x1d78   :  { %v3625_v36 = vmul.f32 %v3613_v37, %v3613_v37  ;;  %v3629_v14 = vsub.f32 %v3605_v9, %v3613_v37 }
0x1d79   :  { %v3624_v33 = vmul.f32 %v3612_v29, %v3612_v29  ;;  %v3618_v34 = vpop.xlane.xlu0 %3617  ;;  %v3628_v11 = vsub.f32 %v3604_v8, %v3612_v29  ;;  %v3754_v29 = vrot.slane %v5159_v43, %v1920_v51  ;;  %v3885_v51 = vld [vmem:[#allocation2 + $0x98] sm:$0xff] }
0x1d7a   :  { %v3622_v16 = vmul.f32 0.03125, %v3618_v34  ;;  %v3621_v35 = vpop.xlane.xlu1 %3620 }
0x1d7b   :  { %v3623_v46 = vmul.f32 0.03125, %v3621_v35 }
0x1d7c   :  { %v3626_v38 = vsub.f32 %v3622_v16, %v3624_v33 }
0x1d7d   :  { %v3627_v49 = vsub.f32 %v3623_v46, %v3625_v36 }
0x1d7e   :  { %v3630_v7 = vadd.f32 1e-12, %v3626_v38 }
0x1d7f   :  { %v3631_v39 = vadd.f32 1e-12, %v3627_v49 }
0x1d80   :  { %4729 = vrsqrt.f32 %v3630_v7 }
0x1d81   :  { %4731 = vrsqrt.f32 %v3631_v39 }
0x1d8a   :  { %v4730_v13 = vpop.eup %4729 }
0x1d8b   :  { %v4732_v44 = vpop.eup %4731  ;;  %v3634_v47 = vmul.f32 %v4730_v13, %v3628_v11  ;;  %v3886_v13 = vld [vmem:[#allocation2 + $0xa0] sm:$0xff] }
0x1d8c   :  { %v3635_v52 = vmul.f32 %v4732_v44, %v3629_v14  ;;  %v4620_v14 = vpack.c.bf16 %v3886_v13, %v3885_v51  ;;  %v3887_v44 = vld [vmem:[#allocation2 + $0xa8] sm:$0xff] }
0x1d8d   :  { %v3640_v0 = vmul.f32 %v3639_v40, %v3634_v47  ;;  %v3888_v47 = vld [vmem:[#allocation2 + $0xb0] sm:$0xff] }
0x1d8e   :  { %v3641_v53 = vmul.f32 %v3639_v40, %v3635_v52  ;;  %v4623_v52 = vpack.c.bf16 %v3888_v47, %v3887_v44 }
0x1d8f   :  { %v3646_v54 = vadd.f32 %v3645_v50, %v3640_v0 }
0x1d90   :  { %v3647_v20 = vadd.f32 %v3645_v50, %v3641_v53  ;;  %v4837_v50 = vmov 0.0|0.0  }
0x1d91   :  { %4474 = vmatprep.mubr.msk.f32.mxu1 %vm155_vm2, %v3646_v54  ;;  %4619 = vmatprep.subr.bf16.mxu1 %v4837_v50 }
0x1d92   :  { %4475 = vmatmul.mubr.msk.f32.vlgmr.msra.gmra.mrb[48].mxu1 %vm155_vm2, %v3647_v20 }
0x1d93   :  { %4504 = vmatprep.mubr.msk.f32.mxu1 %vm4823_vm3, %v4822_v15  ;;  %v3651_v15 = vrot.slane %v5159_v43, %v1817_v27  ;;  %4621 = vmatpush3.bf16.msra.mxu1 %v4620_v14 }
0x1d94   :  { %4622 = vmatprep.subr.bf16.mxu1 %v4837_v50 }
0x1d97   :  { %4624 = vmatpush3.bf16.msra.mxu1 %v4623_v52 }
0x1e65   :  { %v4476_v4 = vpop.f32.mrb[48].mxu1 }
0x1e66   :  { %v3730_v5 = vadd.f32 %v4476_v4, %v3651_v15  ;;  %v3724_v30 = vpop.f32.mrb[49].mxu1 }
0x1e67   :  { %v3725_v6 = vadd.f32 %v3724_v30, %v3651_v15 }
0x1e68   :  { %v3734_v9 = vmul.f32 %v3730_v5, %v3730_v5 }
0x1e69   :  { %v3733_v8 = vmul.f32 %v3725_v6, %v3725_v6 }
0x1e6a   :  { %v3736_v31 = vmul.f32 %v3734_v9, %v3730_v5 }
0x1e6b   :  { %v3735_v10 = vmul.f32 %v3733_v8, %v3725_v6 }
0x1e6c   :  { %v3738_v12 = vmul.f32 0.044715, %v3736_v31 }
0x1e6d   :  { %v3737_v17 = vmul.f32 0.044715, %v3735_v10 }
0x1e6e   :  { %v3740_v18 = vadd.f32 %v3738_v12, %v3730_v5 }
0x1e6f   :  { %v3739_v2 = vadd.f32 %v3737_v17, %v3725_v6 }
0x1e70   :  { %v3742_v19 = vmul.f32 0.7978846, %v3740_v18 }
0x1e71   :  { %v3741_v22 = vmul.f32 0.7978846, %v3739_v2  ;;  %v4743_v2 = vld [vmem:[#allocation2 + $0x90] sm:$0xff] }
0x1e72   :  { %4733 = vtanh.f32 %v3742_v19  ;;  %v3892_v32 = vrot.slane %v4743_v2, %v5113_v56 }
0x1e73   :  { %4735 = vtanh.f32 %v3741_v22 }
0x1e7c   :  { %v4734_v23 = vpop.eup %4733 }
0x1e7d   :  { %v4736_v41 = vpop.eup %4735  ;;  %v3746_v42 = vadd.f32 1.0, %v4734_v23 }
0x1e7e   :  { %v3745_v27 = vadd.f32 1.0, %v4736_v41 }
0x1e7f   :  { %v3748_v24 = vmul.f32 0.5, %v3746_v42 }
0x1e80   :  { %v3747_v58 = vmul.f32 0.5, %v3745_v27 }
0x1e81   :  { %v3750_v37 = vmul.f32 %v3748_v24, %v3730_v5 }
0x1e82   :  { %v3749_v26 = vmul.f32 %v3747_v58, %v3725_v6  ;;  %v3877_v6 = vrot.slane %v5159_v43, %v2044_v60 }
0x1e84   :  { %4493 = vmatprep.mubr.msk.f32.mxu0 %vm1922_vm7, %v3749_v26 }
0x1e85   :  { %4494 = vmatmul.mubr.msk.f32.vlgmr.msra.gmra.mrb[30].mxu0 %vm1922_vm7, %v3750_v37 }
0x1f58   :  { %v4495_v33 = vpop.f32.mrb[30].mxu0 }
0x1f59   :  { %v3833_v34 = vadd.f32 %v4495_v33, %v3754_v29  ;;  %v3827_v16 = vpop.f32.mrb[31].mxu0 }
0x1f5a   :  { %v3828_v35 = vadd.f32 %v3827_v16, %v3754_v29 }
0x1f5b   :  { %v3837_v36 = vadd.f32 %v3833_v34, %v3647_v20 }
0x1f5c   :  { %v3836_v46 = vadd.f32 %v3828_v35, %v3646_v54 }
0x1f5d   :  { %v3841_v38 = vsel %vm155_vm2, %v3837_v36, 0.0  ;;  %v3847_v49 = vmul.f32 %v3837_v36, %v3837_v36 }
0x1f5e   :  { %3842 = vadd.xlane.f32.xlu0 %v3841_v38  ;;  %v3838_v7 = vsel %vm155_vm2, %v3836_v46, 0.0  ;;  %v3846_v39 = vmul.f32 %v3836_v46, %v3836_v46 }
0x1f5f   :  { %3839 = vadd.xlane.f32.xlu1 %v3838_v7  ;;  %v3851_v11 = vsel %vm155_vm2, %v3847_v49, 0.0 }
0x1f60   :  { %v3848_v40 = vsel %vm155_vm2, %v3846_v39, 0.0 }
0x1f62   :  { %3852 = vadd.xlane.f32.xlu0 %v3851_v11 }
0x1f63   :  { %3849 = vadd.xlane.f32.xlu1 %v3848_v40 }
0x1feb   :  { %v3843_v0 = vpop.xlane.xlu0 %3842 }
0x1fec   :  { %v3845_v53 = vmul.f32 0.03125, %v3843_v0  ;;  %v3840_v54 = vpop.xlane.xlu1 %3839 }
0x1fed   :  { %v3844_v20 = vmul.f32 0.03125, %v3840_v54 }
0x1fee   :  { %v3857_v48 = vmul.f32 %v3845_v53, %v3845_v53  ;;  %v3861_v3 = vsub.f32 %v3837_v36, %v3845_v53 }
0x1fef   :  { %v3853_v55 = vpop.xlane.xlu0 %3852  ;;  %v3856_v59 = vmul.f32 %v3844_v20, %v3844_v20  ;;  %v3860_v4 = vsub.f32 %v3836_v46, %v3844_v20 }
0x1ff0   :  { %v3855_v21 = vmul.f32 0.03125, %v3853_v55  ;;  %v3850_v45 = vpop.xlane.xlu1 %3849 }
0x1ff1   :  { %v3854_v57 = vmul.f32 0.03125, %v3850_v45 }
0x1ff2   :  { %v3859_v61 = vsub.f32 %v3855_v21, %v3857_v48 }
0x1ff3   :  { %v3858_v25 = vsub.f32 %v3854_v57, %v3856_v59 }
0x1ff4   :  { %v3863_v62 = vadd.f32 1e-12, %v3859_v61 }
0x1ff5   :  { %v3862_v1 = vadd.f32 1e-12, %v3858_v25 }
0x1ff6   :  { %4737 = vrsqrt.f32 %v3863_v62 }
0x1ff7   :  { %4739 = vrsqrt.f32 %v3862_v1 }
0x2000   :  { %v4738_v15 = vpop.eup %4737 }
0x2001   :  { %v4740_v5 = vpop.eup %4739  ;;  %v3867_v30 = vmul.f32 %v4738_v15, %v3861_v3 }
0x2002   :  { %v3866_v9 = vmul.f32 %v4740_v5, %v3860_v4 }
0x2003   :  { %v3873_v8 = vmul.f32 %v3871_v28, %v3867_v30 }
0x2004   :  { %v3872_v31 = vmul.f32 %v3871_v28, %v3866_v9 }
0x2005   :  { %v3879_v10 = vadd.f32 %v3877_v6, %v3873_v8 }
0x2006   :  { %v3878_v12 = vadd.f32 %v3877_v6, %v3872_v31 }
0x2007   :  { %v3881_v17 = vrot.slane %v3879_v10, 7 }
0x2009   :  { %v3884_v18 = vsel %vm3883_vm8, %v3878_v12, %v3881_v17 }
0x200a   :  { %4505 = vmatmul.mubr.msk.f32.vlgmr.msra.gmra.mrb[50].mxu1 %vm155_vm2, %v3884_v18 }
0x20dd   :  { %v3962_v19 = vpop.f32.mrb[50].mxu1 }
0x20de   :  { %v3963_v22 = vadd.f32 %v3962_v19, %v3892_v32  ;;  %v4506_v63 = vpop.f32.mrb[51].mxu1 }
0x20e0   :  { %3966 = vst [vmem:[#allocation7] sm:$0x3] %v3963_v22 }
0x20e1   :  { %4799 = shalt.err (!%p4796_p6)
}
0x20e2   :  { %s4800_s14 = scalar_lea.hbm %s5392_s4, 32 }
0x20e3   :  { %p4801_p7 = scmp.ne.s32.totalorder %s5392_s4, %s4800_s14  ;;  %p4804_p8 = scmp.lt.u32.totalorder %s4800_s14, %s5392_s4 }
0x20e5   :  { %p4806_p9 = pnand %p4804_p8, %p4801_p7 }
0x20e7   :  { %4809 = shalt.err (!%p4806_p9)
}
0x20e8   :  { %3976 = dma.vmem_to_hbm [thread:$0]  %s3974_s26, 32, %s5392_s4, [#allocation4]  }
0x20e9   :  { %4814 = dma.done.wait [#allocation4], 32  }
0x20ea   :  { %4815 = vsyncadd [#allocation4], 4294967264 }
0x20eb   :  { %3980 = vsyncpa [#allocation3], 1 }
0x20ec   :  { %3981 = vsyncpa [#allocation6], 1 }
0x20ed   :  { %3982 = vsyncpa [#allocation4], 1 }

</bundles_post_ra>
